<compile_context>
chip_gen: v7x
topology: tpu7x:2x2x1
jax: 0.10.0
libtpu: 0.0.40
codegen_flags: <defaults>
</compile_context>

<pallas_src>
import jax
import jax.numpy as jnp
from jax.experimental import pallas as pl
from jax.experimental.pallas import tpu as pltpu


# ----------------------------------------------------------------------------
# Pallas kernel 1: bidirectional single-layer LSTM (MyRNN), one batch element
# per grid step.  State layout on the lane axis: [h_fwd (H) | h_bwd (H)].
# Gate layout on the lane axis: [i_f i_b | f_f f_b | g_f g_b | o_f o_b].
# ----------------------------------------------------------------------------
def _bilstm_kernel(xcat_ref, wih_ref, whh_ref, b_ref, out_ref, hid_ref):
    S = xcat_ref.shape[0]
    H8 = wih_ref.shape[1]
    H2 = H8 // 4                      # 2*H: lane width of the [fwd|bwd] state
    H = H2 // 2

    whh = whh_ref[...]                                           # (2H, 8H) bf16
    # Hoisted input projection: xcat[t] = [x[t] | x[S-1-t]], so one matmul
    # yields the fwd (time t) AND bwd (time S-1-t) pre-activations per step.
    gx = jnp.dot(xcat_ref[...], wih_ref[...],
                 preferred_element_type=jnp.float32) + b_ref[...]  # (S, 8H) f32

    h = jnp.zeros((1, H2), jnp.float32)                          # [h_f | h_b]
    c = jnp.zeros((1, H2), jnp.float32)
    h_steps = []
    # Fully-unrolled static time loop (serial recurrence; S small & static).
    for t in range(S):
        gates = gx[t:t + 1, :] + jnp.dot(
            h.astype(jnp.bfloat16), whh,
            preferred_element_type=jnp.float32)                  # (1, 8H) f32
        i_g = jax.nn.sigmoid(gates[:, 0 * H2:1 * H2])
        f_g = jax.nn.sigmoid(gates[:, 1 * H2:2 * H2])
        g_g = jnp.tanh(gates[:, 2 * H2:3 * H2])
        o_g = jax.nn.sigmoid(gates[:, 3 * H2:4 * H2])
        c = f_g * c + i_g * g_g
        h = o_g * jnp.tanh(c)
        h_steps.append(h)

    # Assemble per-time outputs in original time order (single full-tile store).
    out_f = jnp.concatenate([hs[:, :H] for hs in h_steps], axis=0)        # (S, H)
    out_b = jnp.concatenate([hs[:, H:] for hs in h_steps[::-1]], axis=0)  # (S, H)
    out_ref[...] = jnp.concatenate([out_f, out_b], axis=-1).astype(out_ref.dtype)
    # PyTorch: cat([hidden[-1] (bwd), hidden[-2] (fwd)], dim=-1)
    hid_ref[...] = jnp.concatenate([h[:, H:], h[:, :H]], axis=-1)


def _pack_bilstm_weights(fwd_params, bwd_params):
    """Pack fwd/bwd LSTM weights into the block/interleaved layout above."""
    w_ih_f, w_hh_f, b_ih_f, b_hh_f = fwd_params   # (4H,D),(4H,H),(4H,),(4H,)
    w_ih_b, w_hh_b, b_ih_b, b_hh_b = bwd_params
    H = w_hh_f.shape[1]
    D = w_ih_f.shape[1]

    wihf_t, wihb_t = w_ih_f.T, w_ih_b.T            # (D, 4H), gate order [i f g o]
    whhf_t, whhb_t = w_hh_f.T, w_hh_b.T            # (H, 4H)
    b_f = b_ih_f + b_hh_f
    b_b = b_ih_b + b_hh_b

    zD = jnp.zeros((D, H), jnp.float32)
    zH = jnp.zeros((H, H), jnp.float32)

    def blk(wt_f, wt_b, z, g):
        top = jnp.concatenate([wt_f[:, g * H:(g + 1) * H], z], axis=1)
        bot = jnp.concatenate([z, wt_b[:, g * H:(g + 1) * H]], axis=1)
        return jnp.concatenate([top, bot], axis=0)

    wih_block = jnp.concatenate(
        [blk(wihf_t, wihb_t, zD, g) for g in range(4)], axis=1)   # (2D, 8H)
    whh_block = jnp.concatenate(
        [blk(whhf_t, whhb_t, zH, g) for g in range(4)], axis=1)   # (2H, 8H)
    b_comb = jnp.concatenate(
        [jnp.concatenate([b_f[g * H:(g + 1) * H], b_b[g * H:(g + 1) * H]])
         for g in range(4)]).reshape(1, 8 * H)
    return wih_block, whh_block, b_comb


def bilstm_forward(x, fwd_params, bwd_params):
    B, S, D = x.shape
    H = fwd_params[1].shape[1]
    wih_block, whh_block, b_comb = _pack_bilstm_weights(fwd_params, bwd_params)
    # xcat[b, t] = [x[b, t] | x[b, S-1-t]]  (bwd direction sees reversed time)
    xcat = jnp.concatenate([x, x[:, ::-1, :]], axis=-1).astype(jnp.bfloat16)

    outputs, hid = pl.pallas_call(
        _bilstm_kernel,
        out_shape=(jax.ShapeDtypeStruct((B, S, 2 * H), jnp.bfloat16),
                   jax.ShapeDtypeStruct((B, 1, 2 * H), jnp.float32)),
        grid=(B,),
        in_specs=[
            pl.BlockSpec((pl.Squeezed(), S, 2 * D), lambda i: (i, 0, 0)),
            pl.BlockSpec((2 * D, 8 * H), lambda i: (0, 0)),      # resident
            pl.BlockSpec((2 * H, 8 * H), lambda i: (0, 0)),      # resident
            pl.BlockSpec((1, 8 * H), lambda i: (0, 0)),          # resident
        ],
        out_specs=(
            pl.BlockSpec((pl.Squeezed(), S, 2 * H), lambda i: (i, 0, 0)),
            pl.BlockSpec((pl.Squeezed(), 1, 2 * H), lambda i: (i, 0, 0)),
        ),
        compiler_params=pltpu.CompilerParams(
            dimension_semantics=("parallel",)),
    )(xcat, wih_block.astype(jnp.bfloat16), whh_block.astype(jnp.bfloat16),
      b_comb)
    return outputs, hid[:, 0, :]          # (B, S, 2H) bf16, (B, 2H) f32


# ----------------------------------------------------------------------------
# Pallas kernel 2: fused multi-layer GCN + position-aware attention.
# One batch element per grid step; adj, lstm block and all weights stay
# resident in VMEM across the GCN layers and the attention math.
#   GCN layer:   h = relu(((adj @ h + h) @ W + b) / (deg + 1))
#   PAAttention: s = sum_a w_t[a] * tanh(x W_u + f W_f + qp)[:, a]; masked
#                softmax over seq; out = sum_s weights[s] * gcn_out[s, :]
# ----------------------------------------------------------------------------
def _gcn_pa_attn_kernel(adj_ref, x_ref, f_ref, qp_ref, mb_ref,
                        gw_ref, gb_ref, wu_ref, wf_ref, wt_ref,
                        gcn_ref, out_ref):
    adj = adj_ref[...]                                   # (S, S) bf16
    x_bf = x_ref[...]                                    # (S, D) bf16
    L = gw_ref.shape[0]

    deg = jnp.sum(adj.astype(jnp.float32), axis=1, keepdims=True) + 1.0  # (S,1)
    inv_deg = pl.reciprocal(deg, approx=True)            # EUP, off the VALU

    # ---- GCN stack (adj + activation resident across layers) ----
    h = x_bf.astype(jnp.float32)
    for l in range(L):                                   # static unroll, L small
        ah = jnp.dot(adj, h.astype(jnp.bfloat16),
                     preferred_element_type=jnp.float32) + h            # (S, D)
        ahw = jnp.dot(ah.astype(jnp.bfloat16), gw_ref[l],
                      preferred_element_type=jnp.float32)               # (S, D)
        h = jnp.maximum((ahw + gb_ref[l]) * inv_deg, 0.0)
    gcn_ref[...] = h.astype(gcn_ref.dtype)

    # ---- position-aware attention (query projection hoisted to wrapper) ----
    xp = jnp.dot(x_bf, wu_ref[...], preferred_element_type=jnp.float32)  # (S, A)
    fp = jnp.dot(f_ref[...], wf_ref[...],
                 preferred_element_type=jnp.float32)                     # (S, A)
    hh = jnp.tanh(xp + fp + qp_ref[...])                                 # (S, A) f32
    # N=1 "matmul" done as VPU multiply + lane reduce (no wasted MXU pass)
    sc = jnp.sum(hh * wt_ref[...], axis=1, keepdims=True) + mb_ref[...]  # (S, 1)
    sc = sc - jnp.max(sc, axis=0, keepdims=True)
    e = jnp.exp(sc)
    w = e / jnp.sum(e, axis=0, keepdims=True)            # exact divide (parity)
    out = jnp.sum(w * h, axis=0, keepdims=True)          # (1, D) weighted sum
    out_ref[...] = out.astype(out_ref.dtype)


def gcn_pa_attention(adj, lstm_out_bf, pe_features, hidden_cat, masks_bool,
                     gcn_w, gcn_b, pa_params):
    B, S, D = lstm_out_bf.shape
    F = pe_features.shape[-1]
    L = gcn_w.shape[0]
    wu, bu, wv, wf, wt = pa_params
    A = wu.shape[-1]

    # Hoisted query projection (one small f32 matmul, done once per call).
    qp = (hidden_cat @ wv + bu)[:, None, :]                        # (B, 1, A)
    # Mask precomputed once as an additive bias (f32, kept out of bf16 path).
    mask_bias = jnp.where(masks_bool, jnp.float32(-1e9),
                          jnp.float32(0.0))[:, :, None]            # (B, S, 1)

    gcn_out, attn_out = pl.pallas_call(
        _gcn_pa_attn_kernel,
        out_shape=(jax.ShapeDtypeStruct((B, S, D), jnp.float32),
                   jax.ShapeDtypeStruct((B, 1, D), jnp.float32)),
        grid=(B,),
        in_specs=[
            pl.BlockSpec((pl.Squeezed(), S, S), lambda i: (i, 0, 0)),   # adj
            pl.BlockSpec((pl.Squeezed(), S, D), lambda i: (i, 0, 0)),   # lstm out
            pl.BlockSpec((pl.Squeezed(), S, F), lambda i: (i, 0, 0)),   # pe feats
            pl.BlockSpec((pl.Squeezed(), 1, A), lambda i: (i, 0, 0)),   # qp
            pl.BlockSpec((pl.Squeezed(), S, 1), lambda i: (i, 0, 0)),   # mask bias
            pl.BlockSpec((L, D, D), lambda i: (0, 0, 0)),               # GCN W (resident)
            pl.BlockSpec((L, 1, D), lambda i: (0, 0, 0)),               # GCN b (resident)
            pl.BlockSpec((D, A), lambda i: (0, 0)),                     # W_u
            pl.BlockSpec((F, A), lambda i: (0, 0)),                     # W_f
            pl.BlockSpec((1, A), lambda i: (0, 0)),                     # w_t row
        ],
        out_specs=(
            pl.BlockSpec((pl.Squeezed(), S, D), lambda i: (i, 0, 0)),
            pl.BlockSpec((pl.Squeezed(), 1, D), lambda i: (i, 0, 0)),
        ),
        compiler_params=pltpu.CompilerParams(
            dimension_semantics=("parallel",)),
    )(adj.astype(jnp.bfloat16), lstm_out_bf, pe_features.astype(jnp.bfloat16),
      qp, mask_bias, gcn_w.astype(jnp.bfloat16), gcn_b,
      wu.astype(jnp.bfloat16), wf.astype(jnp.bfloat16), wt.T)
    return gcn_out, attn_out[:, 0, :]                    # (B,S,D), (B,D)


# ----------------------------------------------------------------------------
# Parameter construction (deterministic)
# ----------------------------------------------------------------------------
def init_params(key, mem_dim, pe_dim, num_gcn_layers):
    H = mem_dim // 2
    keys = jax.random.split(key, 32)
    k = iter(keys)

    def rnd(kk, shape, scale=0.1):
        return jax.random.normal(kk, shape, dtype=jnp.float32) * scale

    lstm_fwd = (rnd(next(k), (4 * H, mem_dim)), rnd(next(k), (4 * H, H)),
                rnd(next(k), (4 * H,)), rnd(next(k), (4 * H,)))
    lstm_bwd = (rnd(next(k), (4 * H, mem_dim)), rnd(next(k), (4 * H, H)),
                rnd(next(k), (4 * H,)), rnd(next(k), (4 * H,)))

    gcn_w = jnp.stack([rnd(next(k), (mem_dim, mem_dim))
                       for _ in range(num_gcn_layers)], axis=0)
    gcn_b = jnp.stack([rnd(next(k), (1, mem_dim))
                       for _ in range(num_gcn_layers)], axis=0)

    A = mem_dim            # PAAttention projection size
    pa = (rnd(next(k), (mem_dim, A)),     # W_u
          rnd(next(k), (1, A)),           # b_u
          rnd(next(k), (mem_dim, A)),     # W_v
          rnd(next(k), (pe_dim, A)),      # W_f
          rnd(next(k), (A, 1)))           # w_t

    # self.linear exists in __init__ but is unused in forward; created anyway.
    lin = (rnd(next(k), (mem_dim, mem_dim)), rnd(next(k), (1, mem_dim)))
    return lstm_fwd, lstm_bwd, (gcn_w, gcn_b), pa, lin


# ----------------------------------------------------------------------------
# MyBlock forward (dropout = identity, eval mode)
# ----------------------------------------------------------------------------
@jax.jit
def my_block_forward(inputs, adj, pe_features, masks, params):
    lstm_fwd, lstm_bwd, (gcn_w, gcn_b), pa_params, _lin = params
    lstm_outputs, hidden_cat = bilstm_forward(inputs, lstm_fwd, lstm_bwd)
    # NOTE: the PyTorch forward also computes `out1 = attention(...)` whose
    # result is never used -> intentionally removed (dead MXU flops + DMA).
    gcn_outputs, outputs = gcn_pa_attention(
        adj, lstm_outputs, pe_features, hidden_cat, masks,
        gcn_w, gcn_b, pa_params)
    return outputs, gcn_outputs, hidden_cat


# ----------------------------------------------------------------------------
if __name__ == "__main__":
    B, S, MEM_DIM = 2, 8, 128       # lane-dense feature dim (multiple of 128)
    PE_EMB = 4                      # opt['pe_emb'] -> pe feature dim = 2*PE_EMB
    NUM_GCN_LAYERS = 2              # opt['second_layer']
    PE_DIM = 2 * PE_EMB

    root = jax.random.PRNGKey(0)
    k_in, k_adj, k_pe, k_par = jax.random.split(root, 4)

    inputs = jax.random.normal(k_in, (B, S, MEM_DIM), dtype=jnp.float32)
    adj = (jax.random.uniform(k_adj, (B, S, S)) > 0.6).astype(jnp.float32)
    pe_features = jax.random.normal(k_pe, (B, S, PE_DIM), dtype=jnp.float32)
    # masks: True == padding.  seq lengths [8, 6]
    lengths = jnp.array([8, 6])
    masks = jnp.arange(S)[None, :] >= lengths[:, None]          # (B, S) bool

    params = init_params(k_par, MEM_DIM, PE_DIM, NUM_GCN_LAYERS)

    outputs, gcn_outputs, hidden = my_block_forward(
        inputs, adj, pe_features, masks, params)
    jax.block_until_ready((outputs, gcn_outputs, hidden))

    assert outputs.shape == (B, MEM_DIM)
    assert gcn_outputs.shape == (B, S, MEM_DIM)
    assert hidden.shape == (B, MEM_DIM)
    assert bool(jnp.all(jnp.isfinite(outputs)))
    assert bool(jnp.all(jnp.isfinite(gcn_outputs)))
    assert bool(jnp.all(jnp.isfinite(hidden)))
    print("KERNEL_OK")
</pallas_src>

<mosaic_0001>
module attributes {stable_mosaic.version = 11 : i64} {
  func.func @_bilstm_kernel(%arg0: i32, %arg1: memref<1x8x256xbf16, #tpu.memory_space<vmem>>, %arg2: memref<256x512xbf16, #tpu.memory_space<vmem>>, %arg3: memref<128x512xbf16, #tpu.memory_space<vmem>>, %arg4: memref<1x512xf32, #tpu.memory_space<vmem>>, %arg5: memref<1x8x128xbf16, #tpu.memory_space<vmem>>, %arg6: memref<1x1x128xf32, #tpu.memory_space<vmem>>) attributes {dimension_semantics = [#tpu.dimension_semantics<parallel>], iteration_bounds = array<i64: 2>, scalar_prefetch = 0 : i64, scratch_operands = 0 : i64, tpu.core_type = #tpu.core_type<tc>, window_params = [{transform_indices = @transform_0, window_bounds = array<i64: 1, 8, 256>}, {pipeline_mode = #tpu.pipeline_mode<synchronous>, transform_indices = @transform_1, window_bounds = array<i64: 256, 512>}, {pipeline_mode = #tpu.pipeline_mode<synchronous>, transform_indices = @transform_2, window_bounds = array<i64: 128, 512>}, {pipeline_mode = #tpu.pipeline_mode<synchronous>, transform_indices = @transform_3, window_bounds = array<i64: 1, 512>}, {transform_indices = @transform_4, window_bounds = array<i64: 1, 8, 128>}, {transform_indices = @transform_5, window_bounds = array<i64: 1, 1, 128>}]} {
    %c0 = arith.constant 0 : index
    %c0_0 = arith.constant 0 : index
    %0 = vector.load %arg3[%c0, %c0_0] : memref<128x512xbf16, #tpu.memory_space<vmem>>, vector<128x512xbf16>
    %c0_1 = arith.constant 0 : index
    %c0_2 = arith.constant 0 : index
    %c0_3 = arith.constant 0 : index
    %1 = vector.load %arg1[%c0_1, %c0_2, %c0_3] : memref<1x8x256xbf16, #tpu.memory_space<vmem>>, vector<1x8x256xbf16>
    %2 = vector.shape_cast %1 : vector<1x8x256xbf16> to vector<8x256xbf16>
    %c0_4 = arith.constant 0 : index
    %c0_5 = arith.constant 0 : index
    %3 = vector.load %arg2[%c0_4, %c0_5] : memref<256x512xbf16, #tpu.memory_space<vmem>>, vector<256x512xbf16>
    %cst = arith.constant dense<0.000000e+00> : vector<8x512xf32>
    %4 = tpu.matmul %2, %3, %cst {dimension_numbers = #tpu.dot_dimension_numbers<[1], [0], [0], [1], [0, 0, 1, 1], [], []>} : vector<8x256xbf16>, vector<256x512xbf16>, vector<8x512xf32> -> vector<8x512xf32>
    %c0_6 = arith.constant 0 : index
    %c0_7 = arith.constant 0 : index
    %5 = vector.load %arg4[%c0_6, %c0_7] : memref<1x512xf32, #tpu.memory_space<vmem>>, vector<1x512xf32>
    %6 = vector.broadcast %5 : vector<1x512xf32> to vector<8x512xf32>
    %7 = arith.addf %4, %6 : vector<8x512xf32>
    %cst_8 = arith.constant 0.000000e+00 : f32
    %8 = vector.broadcast %cst_8 : f32 to vector<1x128xf32>
    %cst_9 = arith.constant 0.000000e+00 : f32
    %9 = vector.broadcast %cst_9 : f32 to vector<1x128xf32>
    %10 = vector.extract_strided_slice %7 {offsets = [0, 0], sizes = [1, 512], strides = [1, 1]} : vector<8x512xf32> to vector<1x512xf32>
    %11 = arith.truncf %8 : vector<1x128xf32> to vector<1x128xbf16>
    %cst_10 = arith.constant dense<0.000000e+00> : vector<1x512xf32>
    %12 = tpu.matmul %11, %0, %cst_10 {dimension_numbers = #tpu.dot_dimension_numbers<[1], [0], [0], [1], [0, 0, 1, 1], [], []>} : vector<1x128xbf16>, vector<128x512xbf16>, vector<1x512xf32> -> vector<1x512xf32>
    %13 = arith.addf %10, %12 : vector<1x512xf32>
    %14 = vector.extract_strided_slice %13 {offsets = [0, 0], sizes = [1, 128], strides = [1, 1]} : vector<1x512xf32> to vector<1x128xf32>
    %15 = arith.negf %14 : vector<1x128xf32>
    %16 = math.exp %15 : vector<1x128xf32>
    %cst_11 = arith.constant 1.000000e+00 : f32
    %17 = vector.broadcast %cst_11 : f32 to vector<1x128xf32>
    %18 = arith.addf %17, %16 : vector<1x128xf32>
    %19 = arith.divf %17, %18 : vector<1x128xf32>
    %20 = vector.extract_strided_slice %13 {offsets = [0, 128], sizes = [1, 128], strides = [1, 1]} : vector<1x512xf32> to vector<1x128xf32>
    %21 = arith.negf %20 : vector<1x128xf32>
    %22 = math.exp %21 : vector<1x128xf32>
    %cst_12 = arith.constant 1.000000e+00 : f32
    %23 = vector.broadcast %cst_12 : f32 to vector<1x128xf32>
    %24 = arith.addf %23, %22 : vector<1x128xf32>
    %25 = arith.divf %23, %24 : vector<1x128xf32>
    %26 = vector.extract_strided_slice %13 {offsets = [0, 256], sizes = [1, 128], strides = [1, 1]} : vector<1x512xf32> to vector<1x128xf32>
    %27 = math.tanh %26 : vector<1x128xf32>
    %28 = vector.extract_strided_slice %13 {offsets = [0, 384], sizes = [1, 128], strides = [1, 1]} : vector<1x512xf32> to vector<1x128xf32>
    %29 = arith.negf %28 : vector<1x128xf32>
    %30 = math.exp %29 : vector<1x128xf32>
    %cst_13 = arith.constant 1.000000e+00 : f32
    %31 = vector.broadcast %cst_13 : f32 to vector<1x128xf32>
    %32 = arith.addf %31, %30 : vector<1x128xf32>
    %33 = arith.divf %31, %32 : vector<1x128xf32>
    %34 = arith.mulf %25, %9 : vector<1x128xf32>
    %35 = arith.mulf %19, %27 : vector<1x128xf32>
    %36 = arith.addf %34, %35 : vector<1x128xf32>
    %37 = math.tanh %36 : vector<1x128xf32>
    %38 = arith.mulf %33, %37 : vector<1x128xf32>
    %39 = vector.extract_strided_slice %7 {offsets = [1, 0], sizes = [1, 512], strides = [1, 1]} : vector<8x512xf32> to vector<1x512xf32>
    %40 = arith.truncf %38 : vector<1x128xf32> to vector<1x128xbf16>
    %cst_14 = arith.constant dense<0.000000e+00> : vector<1x512xf32>
    %41 = tpu.matmul %40, %0, %cst_14 {dimension_numbers = #tpu.dot_dimension_numbers<[1], [0], [0], [1], [0, 0, 1, 1], [], []>} : vector<1x128xbf16>, vector<128x512xbf16>, vector<1x512xf32> -> vector<1x512xf32>
    %42 = arith.addf %39, %41 : vector<1x512xf32>
    %43 = vector.extract_strided_slice %42 {offsets = [0, 0], sizes = [1, 128], strides = [1, 1]} : vector<1x512xf32> to vector<1x128xf32>
    %44 = arith.negf %43 : vector<1x128xf32>
    %45 = math.exp %44 : vector<1x128xf32>
    %cst_15 = arith.constant 1.000000e+00 : f32
    %46 = vector.broadcast %cst_15 : f32 to vector<1x128xf32>
    %47 = arith.addf %46, %45 : vector<1x128xf32>
    %48 = arith.divf %46, %47 : vector<1x128xf32>
    %49 = vector.extract_strided_slice %42 {offsets = [0, 128], sizes = [1, 128], strides = [1, 1]} : vector<1x512xf32> to vector<1x128xf32>
    %50 = arith.negf %49 : vector<1x128xf32>
    %51 = math.exp %50 : vector<1x128xf32>
    %cst_16 = arith.constant 1.000000e+00 : f32
    %52 = vector.broadcast %cst_16 : f32 to vector<1x128xf32>
    %53 = arith.addf %52, %51 : vector<1x128xf32>
    %54 = arith.divf %52, %53 : vector<1x128xf32>
    %55 = vector.extract_strided_slice %42 {offsets = [0, 256], sizes = [1, 128], strides = [1, 1]} : vector<1x512xf32> to vector<1x128xf32>
    %56 = math.tanh %55 : vector<1x128xf32>
    %57 = vector.extract_strided_slice %42 {offsets = [0, 384], sizes = [1, 128], strides = [1, 1]} : vector<1x512xf32> to vector<1x128xf32>
    %58 = arith.negf %57 : vector<1x128xf32>
    %59 = math.exp %58 : vector<1x128xf32>
    %cst_17 = arith.constant 1.000000e+00 : f32
    %60 = vector.broadcast %cst_17 : f32 to vector<1x128xf32>
    %61 = arith.addf %60, %59 : vector<1x128xf32>
    %62 = arith.divf %60, %61 : vector<1x128xf32>
    %63 = arith.mulf %54, %36 : vector<1x128xf32>
    %64 = arith.mulf %48, %56 : vector<1x128xf32>
    %65 = arith.addf %63, %64 : vector<1x128xf32>
    %66 = math.tanh %65 : vector<1x128xf32>
    %67 = arith.mulf %62, %66 : vector<1x128xf32>
    %68 = vector.extract_strided_slice %7 {offsets = [2, 0], sizes = [1, 512], strides = [1, 1]} : vector<8x512xf32> to vector<1x512xf32>
    %69 = arith.truncf %67 : vector<1x128xf32> to vector<1x128xbf16>
    %cst_18 = arith.constant dense<0.000000e+00> : vector<1x512xf32>
    %70 = tpu.matmul %69, %0, %cst_18 {dimension_numbers = #tpu.dot_dimension_numbers<[1], [0], [0], [1], [0, 0, 1, 1], [], []>} : vector<1x128xbf16>, vector<128x512xbf16>, vector<1x512xf32> -> vector<1x512xf32>
    %71 = arith.addf %68, %70 : vector<1x512xf32>
    %72 = vector.extract_strided_slice %71 {offsets = [0, 0], sizes = [1, 128], strides = [1, 1]} : vector<1x512xf32> to vector<1x128xf32>
    %73 = arith.negf %72 : vector<1x128xf32>
    %74 = math.exp %73 : vector<1x128xf32>
    %cst_19 = arith.constant 1.000000e+00 : f32
    %75 = vector.broadcast %cst_19 : f32 to vector<1x128xf32>
    %76 = arith.addf %75, %74 : vector<1x128xf32>
    %77 = arith.divf %75, %76 : vector<1x128xf32>
    %78 = vector.extract_strided_slice %71 {offsets = [0, 128], sizes = [1, 128], strides = [1, 1]} : vector<1x512xf32> to vector<1x128xf32>
    %79 = arith.negf %78 : vector<1x128xf32>
    %80 = math.exp %79 : vector<1x128xf32>
    %cst_20 = arith.constant 1.000000e+00 : f32
    %81 = vector.broadcast %cst_20 : f32 to vector<1x128xf32>
    %82 = arith.addf %81, %80 : vector<1x128xf32>
    %83 = arith.divf %81, %82 : vector<1x128xf32>
    %84 = vector.extract_strided_slice %71 {offsets = [0, 256], sizes = [1, 128], strides = [1, 1]} : vector<1x512xf32> to vector<1x128xf32>
    %85 = math.tanh %84 : vector<1x128xf32>
    %86 = vector.extract_strided_slice %71 {offsets = [0, 384], sizes = [1, 128], strides = [1, 1]} : vector<1x512xf32> to vector<1x128xf32>
    %87 = arith.negf %86 : vector<1x128xf32>
    %88 = math.exp %87 : vector<1x128xf32>
    %cst_21 = arith.constant 1.000000e+00 : f32
    %89 = vector.broadcast %cst_21 : f32 to vector<1x128xf32>
    %90 = arith.addf %89, %88 : vector<1x128xf32>
    %91 = arith.divf %89, %90 : vector<1x128xf32>
    %92 = arith.mulf %83, %65 : vector<1x128xf32>
    %93 = arith.mulf %77, %85 : vector<1x128xf32>
    %94 = arith.addf %92, %93 : vector<1x128xf32>
    %95 = math.tanh %94 : vector<1x128xf32>
    %96 = arith.mulf %91, %95 : vector<1x128xf32>
    %97 = vector.extract_strided_slice %7 {offsets = [3, 0], sizes = [1, 512], strides = [1, 1]} : vector<8x512xf32> to vector<1x512xf32>
    %98 = arith.truncf %96 : vector<1x128xf32> to vector<1x128xbf16>
    %cst_22 = arith.constant dense<0.000000e+00> : vector<1x512xf32>
    %99 = tpu.matmul %98, %0, %cst_22 {dimension_numbers = #tpu.dot_dimension_numbers<[1], [0], [0], [1], [0, 0, 1, 1], [], []>} : vector<1x128xbf16>, vector<128x512xbf16>, vector<1x512xf32> -> vector<1x512xf32>
    %100 = arith.addf %97, %99 : vector<1x512xf32>
    %101 = vector.extract_strided_slice %100 {offsets = [0, 0], sizes = [1, 128], strides = [1, 1]} : vector<1x512xf32> to vector<1x128xf32>
    %102 = arith.negf %101 : vector<1x128xf32>
    %103 = math.exp %102 : vector<1x128xf32>
    %cst_23 = arith.constant 1.000000e+00 : f32
    %104 = vector.broadcast %cst_23 : f32 to vector<1x128xf32>
    %105 = arith.addf %104, %103 : vector<1x128xf32>
    %106 = arith.divf %104, %105 : vector<1x128xf32>
    %107 = vector.extract_strided_slice %100 {offsets = [0, 128], sizes = [1, 128], strides = [1, 1]} : vector<1x512xf32> to vector<1x128xf32>
    %108 = arith.negf %107 : vector<1x128xf32>
    %109 = math.exp %108 : vector<1x128xf32>
    %cst_24 = arith.constant 1.000000e+00 : f32
    %110 = vector.broadcast %cst_24 : f32 to vector<1x128xf32>
    %111 = arith.addf %110, %109 : vector<1x128xf32>
    %112 = arith.divf %110, %111 : vector<1x128xf32>
    %113 = vector.extract_strided_slice %100 {offsets = [0, 256], sizes = [1, 128], strides = [1, 1]} : vector<1x512xf32> to vector<1x128xf32>
    %114 = math.tanh %113 : vector<1x128xf32>
    %115 = vector.extract_strided_slice %100 {offsets = [0, 384], sizes = [1, 128], strides = [1, 1]} : vector<1x512xf32> to vector<1x128xf32>
    %116 = arith.negf %115 : vector<1x128xf32>
    %117 = math.exp %116 : vector<1x128xf32>
    %cst_25 = arith.constant 1.000000e+00 : f32
    %118 = vector.broadcast %cst_25 : f32 to vector<1x128xf32>
    %119 = arith.addf %118, %117 : vector<1x128xf32>
    %120 = arith.divf %118, %119 : vector<1x128xf32>
    %121 = arith.mulf %112, %94 : vector<1x128xf32>
    %122 = arith.mulf %106, %114 : vector<1x128xf32>
    %123 = arith.addf %121, %122 : vector<1x128xf32>
    %124 = math.tanh %123 : vector<1x128xf32>
    %125 = arith.mulf %120, %124 : vector<1x128xf32>
    %126 = vector.extract_strided_slice %7 {offsets = [4, 0], sizes = [1, 512], strides = [1, 1]} : vector<8x512xf32> to vector<1x512xf32>
    %127 = arith.truncf %125 : vector<1x128xf32> to vector<1x128xbf16>
    %cst_26 = arith.constant dense<0.000000e+00> : vector<1x512xf32>
    %128 = tpu.matmul %127, %0, %cst_26 {dimension_numbers = #tpu.dot_dimension_numbers<[1], [0], [0], [1], [0, 0, 1, 1], [], []>} : vector<1x128xbf16>, vector<128x512xbf16>, vector<1x512xf32> -> vector<1x512xf32>
    %129 = arith.addf %126, %128 : vector<1x512xf32>
    %130 = vector.extract_strided_slice %129 {offsets = [0, 0], sizes = [1, 128], strides = [1, 1]} : vector<1x512xf32> to vector<1x128xf32>
    %131 = arith.negf %130 : vector<1x128xf32>
    %132 = math.exp %131 : vector<1x128xf32>
    %cst_27 = arith.constant 1.000000e+00 : f32
    %133 = vector.broadcast %cst_27 : f32 to vector<1x128xf32>
    %134 = arith.addf %133, %132 : vector<1x128xf32>
    %135 = arith.divf %133, %134 : vector<1x128xf32>
    %136 = vector.extract_strided_slice %129 {offsets = [0, 128], sizes = [1, 128], strides = [1, 1]} : vector<1x512xf32> to vector<1x128xf32>
    %137 = arith.negf %136 : vector<1x128xf32>
    %138 = math.exp %137 : vector<1x128xf32>
    %cst_28 = arith.constant 1.000000e+00 : f32
    %139 = vector.broadcast %cst_28 : f32 to vector<1x128xf32>
    %140 = arith.addf %139, %138 : vector<1x128xf32>
    %141 = arith.divf %139, %140 : vector<1x128xf32>
    %142 = vector.extract_strided_slice %129 {offsets = [0, 256], sizes = [1, 128], strides = [1, 1]} : vector<1x512xf32> to vector<1x128xf32>
    %143 = math.tanh %142 : vector<1x128xf32>
    %144 = vector.extract_strided_slice %129 {offsets = [0, 384], sizes = [1, 128], strides = [1, 1]} : vector<1x512xf32> to vector<1x128xf32>
    %145 = arith.negf %144 : vector<1x128xf32>
    %146 = math.exp %145 : vector<1x128xf32>
    %cst_29 = arith.constant 1.000000e+00 : f32
    %147 = vector.broadcast %cst_29 : f32 to vector<1x128xf32>
    %148 = arith.addf %147, %146 : vector<1x128xf32>
    %149 = arith.divf %147, %148 : vector<1x128xf32>
    %150 = arith.mulf %141, %123 : vector<1x128xf32>
    %151 = arith.mulf %135, %143 : vector<1x128xf32>
    %152 = arith.addf %150, %151 : vector<1x128xf32>
    %153 = math.tanh %152 : vector<1x128xf32>
    %154 = arith.mulf %149, %153 : vector<1x128xf32>
    %155 = vector.extract_strided_slice %7 {offsets = [5, 0], sizes = [1, 512], strides = [1, 1]} : vector<8x512xf32> to vector<1x512xf32>
    %156 = arith.truncf %154 : vector<1x128xf32> to vector<1x128xbf16>
    %cst_30 = arith.constant dense<0.000000e+00> : vector<1x512xf32>
    %157 = tpu.matmul %156, %0, %cst_30 {dimension_numbers = #tpu.dot_dimension_numbers<[1], [0], [0], [1], [0, 0, 1, 1], [], []>} : vector<1x128xbf16>, vector<128x512xbf16>, vector<1x512xf32> -> vector<1x512xf32>
    %158 = arith.addf %155, %157 : vector<1x512xf32>
    %159 = vector.extract_strided_slice %158 {offsets = [0, 0], sizes = [1, 128], strides = [1, 1]} : vector<1x512xf32> to vector<1x128xf32>
    %160 = arith.negf %159 : vector<1x128xf32>
    %161 = math.exp %160 : vector<1x128xf32>
    %cst_31 = arith.constant 1.000000e+00 : f32
    %162 = vector.broadcast %cst_31 : f32 to vector<1x128xf32>
    %163 = arith.addf %162, %161 : vector<1x128xf32>
    %164 = arith.divf %162, %163 : vector<1x128xf32>
    %165 = vector.extract_strided_slice %158 {offsets = [0, 128], sizes = [1, 128], strides = [1, 1]} : vector<1x512xf32> to vector<1x128xf32>
    %166 = arith.negf %165 : vector<1x128xf32>
    %167 = math.exp %166 : vector<1x128xf32>
    %cst_32 = arith.constant 1.000000e+00 : f32
    %168 = vector.broadcast %cst_32 : f32 to vector<1x128xf32>
    %169 = arith.addf %168, %167 : vector<1x128xf32>
    %170 = arith.divf %168, %169 : vector<1x128xf32>
    %171 = vector.extract_strided_slice %158 {offsets = [0, 256], sizes = [1, 128], strides = [1, 1]} : vector<1x512xf32> to vector<1x128xf32>
    %172 = math.tanh %171 : vector<1x128xf32>
    %173 = vector.extract_strided_slice %158 {offsets = [0, 384], sizes = [1, 128], strides = [1, 1]} : vector<1x512xf32> to vector<1x128xf32>
    %174 = arith.negf %173 : vector<1x128xf32>
    %175 = math.exp %174 : vector<1x128xf32>
    %cst_33 = arith.constant 1.000000e+00 : f32
    %176 = vector.broadcast %cst_33 : f32 to vector<1x128xf32>
    %177 = arith.addf %176, %175 : vector<1x128xf32>
    %178 = arith.divf %176, %177 : vector<1x128xf32>
    %179 = arith.mulf %170, %152 : vector<1x128xf32>
    %180 = arith.mulf %164, %172 : vector<1x128xf32>
    %181 = arith.addf %179, %180 : vector<1x128xf32>
    %182 = math.tanh %181 : vector<1x128xf32>
    %183 = arith.mulf %178, %182 : vector<1x128xf32>
    %184 = vector.extract_strided_slice %7 {offsets = [6, 0], sizes = [1, 512], strides = [1, 1]} : vector<8x512xf32> to vector<1x512xf32>
    %185 = arith.truncf %183 : vector<1x128xf32> to vector<1x128xbf16>
    %cst_34 = arith.constant dense<0.000000e+00> : vector<1x512xf32>
    %186 = tpu.matmul %185, %0, %cst_34 {dimension_numbers = #tpu.dot_dimension_numbers<[1], [0], [0], [1], [0, 0, 1, 1], [], []>} : vector<1x128xbf16>, vector<128x512xbf16>, vector<1x512xf32> -> vector<1x512xf32>
    %187 = arith.addf %184, %186 : vector<1x512xf32>
    %188 = vector.extract_strided_slice %187 {offsets = [0, 0], sizes = [1, 128], strides = [1, 1]} : vector<1x512xf32> to vector<1x128xf32>
    %189 = arith.negf %188 : vector<1x128xf32>
    %190 = math.exp %189 : vector<1x128xf32>
    %cst_35 = arith.constant 1.000000e+00 : f32
    %191 = vector.broadcast %cst_35 : f32 to vector<1x128xf32>
    %192 = arith.addf %191, %190 : vector<1x128xf32>
    %193 = arith.divf %191, %192 : vector<1x128xf32>
    %194 = vector.extract_strided_slice %187 {offsets = [0, 128], sizes = [1, 128], strides = [1, 1]} : vector<1x512xf32> to vector<1x128xf32>
    %195 = arith.negf %194 : vector<1x128xf32>
    %196 = math.exp %195 : vector<1x128xf32>
    %cst_36 = arith.constant 1.000000e+00 : f32
    %197 = vector.broadcast %cst_36 : f32 to vector<1x128xf32>
    %198 = arith.addf %197, %196 : vector<1x128xf32>
    %199 = arith.divf %197, %198 : vector<1x128xf32>
    %200 = vector.extract_strided_slice %187 {offsets = [0, 256], sizes = [1, 128], strides = [1, 1]} : vector<1x512xf32> to vector<1x128xf32>
    %201 = math.tanh %200 : vector<1x128xf32>
    %202 = vector.extract_strided_slice %187 {offsets = [0, 384], sizes = [1, 128], strides = [1, 1]} : vector<1x512xf32> to vector<1x128xf32>
    %203 = arith.negf %202 : vector<1x128xf32>
    %204 = math.exp %203 : vector<1x128xf32>
    %cst_37 = arith.constant 1.000000e+00 : f32
    %205 = vector.broadcast %cst_37 : f32 to vector<1x128xf32>
    %206 = arith.addf %205, %204 : vector<1x128xf32>
    %207 = arith.divf %205, %206 : vector<1x128xf32>
    %208 = arith.mulf %199, %181 : vector<1x128xf32>
    %209 = arith.mulf %193, %201 : vector<1x128xf32>
    %210 = arith.addf %208, %209 : vector<1x128xf32>
    %211 = math.tanh %210 : vector<1x128xf32>
    %212 = arith.mulf %207, %211 : vector<1x128xf32>
    %213 = vector.extract_strided_slice %7 {offsets = [7, 0], sizes = [1, 512], strides = [1, 1]} : vector<8x512xf32> to vector<1x512xf32>
    %214 = arith.truncf %212 : vector<1x128xf32> to vector<1x128xbf16>
    %cst_38 = arith.constant dense<0.000000e+00> : vector<1x512xf32>
    %215 = tpu.matmul %214, %0, %cst_38 {dimension_numbers = #tpu.dot_dimension_numbers<[1], [0], [0], [1], [0, 0, 1, 1], [], []>} : vector<1x128xbf16>, vector<128x512xbf16>, vector<1x512xf32> -> vector<1x512xf32>
    %216 = arith.addf %213, %215 : vector<1x512xf32>
    %217 = vector.extract_strided_slice %216 {offsets = [0, 0], sizes = [1, 128], strides = [1, 1]} : vector<1x512xf32> to vector<1x128xf32>
    %218 = arith.negf %217 : vector<1x128xf32>
    %219 = math.exp %218 : vector<1x128xf32>
    %cst_39 = arith.constant 1.000000e+00 : f32
    %220 = vector.broadcast %cst_39 : f32 to vector<1x128xf32>
    %221 = arith.addf %220, %219 : vector<1x128xf32>
    %222 = arith.divf %220, %221 : vector<1x128xf32>
    %223 = vector.extract_strided_slice %216 {offsets = [0, 128], sizes = [1, 128], strides = [1, 1]} : vector<1x512xf32> to vector<1x128xf32>
    %224 = arith.negf %223 : vector<1x128xf32>
    %225 = math.exp %224 : vector<1x128xf32>
    %cst_40 = arith.constant 1.000000e+00 : f32
    %226 = vector.broadcast %cst_40 : f32 to vector<1x128xf32>
    %227 = arith.addf %226, %225 : vector<1x128xf32>
    %228 = arith.divf %226, %227 : vector<1x128xf32>
    %229 = vector.extract_strided_slice %216 {offsets = [0, 256], sizes = [1, 128], strides = [1, 1]} : vector<1x512xf32> to vector<1x128xf32>
    %230 = math.tanh %229 : vector<1x128xf32>
    %231 = vector.extract_strided_slice %216 {offsets = [0, 384], sizes = [1, 128], strides = [1, 1]} : vector<1x512xf32> to vector<1x128xf32>
    %232 = arith.negf %231 : vector<1x128xf32>
    %233 = math.exp %232 : vector<1x128xf32>
    %cst_41 = arith.constant 1.000000e+00 : f32
    %234 = vector.broadcast %cst_41 : f32 to vector<1x128xf32>
    %235 = arith.addf %234, %233 : vector<1x128xf32>
    %236 = arith.divf %234, %235 : vector<1x128xf32>
    %237 = arith.mulf %228, %210 : vector<1x128xf32>
    %238 = arith.mulf %222, %230 : vector<1x128xf32>
    %239 = arith.addf %237, %238 : vector<1x128xf32>
    %240 = math.tanh %239 : vector<1x128xf32>
    %241 = arith.mulf %236, %240 : vector<1x128xf32>
    %242 = vector.extract_strided_slice %38 {offsets = [0, 0], sizes = [1, 64], strides = [1, 1]} : vector<1x128xf32> to vector<1x64xf32>
    %243 = vector.extract_strided_slice %67 {offsets = [0, 0], sizes = [1, 64], strides = [1, 1]} : vector<1x128xf32> to vector<1x64xf32>
    %244 = vector.extract_strided_slice %96 {offsets = [0, 0], sizes = [1, 64], strides = [1, 1]} : vector<1x128xf32> to vector<1x64xf32>
    %245 = vector.extract_strided_slice %125 {offsets = [0, 0], sizes = [1, 64], strides = [1, 1]} : vector<1x128xf32> to vector<1x64xf32>
    %246 = vector.extract_strided_slice %154 {offsets = [0, 0], sizes = [1, 64], strides = [1, 1]} : vector<1x128xf32> to vector<1x64xf32>
    %247 = vector.extract_strided_slice %183 {offsets = [0, 0], sizes = [1, 64], strides = [1, 1]} : vector<1x128xf32> to vector<1x64xf32>
    %248 = vector.extract_strided_slice %212 {offsets = [0, 0], sizes = [1, 64], strides = [1, 1]} : vector<1x128xf32> to vector<1x64xf32>
    %249 = vector.extract_strided_slice %241 {offsets = [0, 0], sizes = [1, 64], strides = [1, 1]} : vector<1x128xf32> to vector<1x64xf32>
    %250 = tpu.concatenate %242, %243, %244, %245, %246, %247, %248, %249 in 0 : vector<1x64xf32>, vector<1x64xf32>, vector<1x64xf32>, vector<1x64xf32>, vector<1x64xf32>, vector<1x64xf32>, vector<1x64xf32>, vector<1x64xf32> -> vector<8x64xf32>
    %251 = vector.extract_strided_slice %241 {offsets = [0, 64], sizes = [1, 64], strides = [1, 1]} : vector<1x128xf32> to vector<1x64xf32>
    %252 = vector.extract_strided_slice %212 {offsets = [0, 64], sizes = [1, 64], strides = [1, 1]} : vector<1x128xf32> to vector<1x64xf32>
    %253 = vector.extract_strided_slice %183 {offsets = [0, 64], sizes = [1, 64], strides = [1, 1]} : vector<1x128xf32> to vector<1x64xf32>
    %254 = vector.extract_strided_slice %154 {offsets = [0, 64], sizes = [1, 64], strides = [1, 1]} : vector<1x128xf32> to vector<1x64xf32>
    %255 = vector.extract_strided_slice %125 {offsets = [0, 64], sizes = [1, 64], strides = [1, 1]} : vector<1x128xf32> to vector<1x64xf32>
    %256 = vector.extract_strided_slice %96 {offsets = [0, 64], sizes = [1, 64], strides = [1, 1]} : vector<1x128xf32> to vector<1x64xf32>
    %257 = vector.extract_strided_slice %67 {offsets = [0, 64], sizes = [1, 64], strides = [1, 1]} : vector<1x128xf32> to vector<1x64xf32>
    %258 = vector.extract_strided_slice %38 {offsets = [0, 64], sizes = [1, 64], strides = [1, 1]} : vector<1x128xf32> to vector<1x64xf32>
    %259 = tpu.concatenate %251, %252, %253, %254, %255, %256, %257, %258 in 0 : vector<1x64xf32>, vector<1x64xf32>, vector<1x64xf32>, vector<1x64xf32>, vector<1x64xf32>, vector<1x64xf32>, vector<1x64xf32>, vector<1x64xf32> -> vector<8x64xf32>
    %260 = tpu.concatenate %250, %259 in 1 : vector<8x64xf32>, vector<8x64xf32> -> vector<8x128xf32>
    %261 = arith.truncf %260 : vector<8x128xf32> to vector<8x128xbf16>
    %c0_42 = arith.constant 0 : index
    %c0_43 = arith.constant 0 : index
    %c0_44 = arith.constant 0 : index
    %262 = vector.load %arg5[%c0_42, %c0_43, %c0_44] : memref<1x8x128xbf16, #tpu.memory_space<vmem>>, vector<1x8x128xbf16>
    %263 = vector.shape_cast %262 : vector<1x8x128xbf16> to vector<8x128xbf16>
    %264 = vector.shape_cast %261 : vector<8x128xbf16> to vector<1x8x128xbf16>
    tpu.vector_store %arg5[%c0_42, %c0_43, %c0_44], %264 {strides = array<i32>} : memref<1x8x128xbf16, #tpu.memory_space<vmem>>, vector<1x8x128xbf16>,
    %265 = vector.extract_strided_slice %241 {offsets = [0, 64], sizes = [1, 64], strides = [1, 1]} : vector<1x128xf32> to vector<1x64xf32>
    %266 = vector.extract_strided_slice %241 {offsets = [0, 0], sizes = [1, 64], strides = [1, 1]} : vector<1x128xf32> to vector<1x64xf32>
    %267 = tpu.concatenate %265, %266 in 1 : vector<1x64xf32>, vector<1x64xf32> -> vector<1x128xf32>
    %c0_45 = arith.constant 0 : index
    %c0_46 = arith.constant 0 : index
    %c0_47 = arith.constant 0 : index
    %268 = vector.load %arg6[%c0_45, %c0_46, %c0_47] : memref<1x1x128xf32, #tpu.memory_space<vmem>>, vector<1x1x128xf32>
    %269 = vector.shape_cast %268 : vector<1x1x128xf32> to vector<1x128xf32>
    %270 = vector.shape_cast %267 : vector<1x128xf32> to vector<1x1x128xf32>
    tpu.vector_store %arg6[%c0_45, %c0_46, %c0_47], %270 {strides = array<i32>} : memref<1x1x128xf32, #tpu.memory_space<vmem>>, vector<1x1x128xf32>,
    return
  }
  func.func @transform_0(%arg0: i32) -> (i32, i32, i32) {
    %c0_i32 = arith.constant 0 : i32
    %c0_i32_0 = arith.constant 0 : i32
    %c0_i32_1 = arith.constant 0 : i32
    return %arg0, %c0_i32, %c0_i32_0 : i32, i32, i32
  }
  func.func @transform_1(%arg0: i32) -> (i32, i32) {
    %c0_i32 = arith.constant 0 : i32
    %c0_i32_0 = arith.constant 0 : i32
    %c0_i32_1 = arith.constant 0 : i32
    return %c0_i32, %c0_i32_0 : i32, i32
  }
  func.func @transform_2(%arg0: i32) -> (i32, i32) {
    %c0_i32 = arith.constant 0 : i32
    %c0_i32_0 = arith.constant 0 : i32
    %c0_i32_1 = arith.constant 0 : i32
    return %c0_i32, %c0_i32_0 : i32, i32
  }
  func.func @transform_3(%arg0: i32) -> (i32, i32) {
    %c0_i32 = arith.constant 0 : i32
    %c0_i32_0 = arith.constant 0 : i32
    %c0_i32_1 = arith.constant 0 : i32
    return %c0_i32, %c0_i32_0 : i32, i32
  }
  func.func @transform_4(%arg0: i32) -> (i32, i32, i32) {
    %c0_i32 = arith.constant 0 : i32
    %c0_i32_0 = arith.constant 0 : i32
    %c0_i32_1 = arith.constant 0 : i32
    return %arg0, %c0_i32, %c0_i32_0 : i32, i32, i32
  }
  func.func @transform_5(%arg0: i32) -> (i32, i32, i32) {
    %c0_i32 = arith.constant 0 : i32
    %c0_i32_0 = arith.constant 0 : i32
    %c0_i32_1 = arith.constant 0 : i32
    return %arg0, %c0_i32, %c0_i32_0 : i32, i32, i32
  }
}

module attributes {stable_mosaic.version = 11 : i64} {
  func.func @_gcn_pa_attn_kernel(%arg0: i32, %arg1: memref<1x8x8xbf16, #tpu.memory_space<vmem>>, %arg2: memref<1x8x128xbf16, #tpu.memory_space<vmem>>, %arg3: memref<1x8x8xbf16, #tpu.memory_space<vmem>>, %arg4: memref<1x1x128xf32, #tpu.memory_space<vmem>>, %arg5: memref<1x8x1xf32, #tpu.memory_space<vmem>>, %arg6: memref<2x128x128xbf16, #tpu.memory_space<vmem>>, %arg7: memref<2x1x128xf32, #tpu.memory_space<vmem>>, %arg8: memref<128x128xbf16, #tpu.memory_space<vmem>>, %arg9: memref<8x128xbf16, #tpu.memory_space<vmem>>, %arg10: memref<1x128xf32, #tpu.memory_space<vmem>>, %arg11: memref<1x8x128xf32, #tpu.memory_space<vmem>>, %arg12: memref<1x1x128xf32, #tpu.memory_space<vmem>>) attributes {dimension_semantics = [#tpu.dimension_semantics<parallel>], iteration_bounds = array<i64: 2>, scalar_prefetch = 0 : i64, scratch_operands = 0 : i64, tpu.core_type = #tpu.core_type<tc>, window_params = [{transform_indices = @transform_0, window_bounds = array<i64: 1, 8, 8>}, {transform_indices = @transform_1, window_bounds = array<i64: 1, 8, 128>}, {transform_indices = @transform_2, window_bounds = array<i64: 1, 8, 8>}, {transform_indices = @transform_3, window_bounds = array<i64: 1, 1, 128>}, {transform_indices = @transform_4, window_bounds = array<i64: 1, 8, 1>}, {pipeline_mode = #tpu.pipeline_mode<synchronous>, transform_indices = @transform_5, window_bounds = array<i64: 2, 128, 128>}, {pipeline_mode = #tpu.pipeline_mode<synchronous>, transform_indices = @transform_6, window_bounds = array<i64: 2, 1, 128>}, {pipeline_mode = #tpu.pipeline_mode<synchronous>, transform_indices = @transform_7, window_bounds = array<i64: 128, 128>}, {pipeline_mode = #tpu.pipeline_mode<synchronous>, transform_indices = @transform_8, window_bounds = array<i64: 8, 128>}, {pipeline_mode = #tpu.pipeline_mode<synchronous>, transform_indices = @transform_9, window_bounds = array<i64: 1, 128>}, {transform_indices = @transform_10, window_bounds = array<i64: 1, 8, 128>}, {transform_indices = @transform_11, window_bounds = array<i64: 1, 1, 128>}]} {
    %c0 = arith.constant 0 : index
    %c0_0 = arith.constant 0 : index
    %c0_1 = arith.constant 0 : index
    %0 = vector.load %arg1[%c0, %c0_0, %c0_1] : memref<1x8x8xbf16, #tpu.memory_space<vmem>>, vector<1x8x8xbf16>
    %1 = vector.shape_cast %0 : vector<1x8x8xbf16> to vector<8x8xbf16>
    %c0_2 = arith.constant 0 : index
    %c0_3 = arith.constant 0 : index
    %c0_4 = arith.constant 0 : index
    %2 = vector.load %arg2[%c0_2, %c0_3, %c0_4] : memref<1x8x128xbf16, #tpu.memory_space<vmem>>, vector<1x8x128xbf16>
    %3 = vector.shape_cast %2 : vector<1x8x128xbf16> to vector<8x128xbf16>
    %4 = arith.extf %1 : vector<8x8xbf16> to vector<8x8xf32>
    %cst = arith.constant dense<0.000000e+00> : vector<8xf32>
    %5 = vector.multi_reduction <add>, %4, %cst [1] : vector<8x8xf32> to vector<8xf32>
    %6 = vector.shape_cast %5 : vector<8xf32> to vector<8x1xf32>
    %cst_5 = arith.constant 1.000000e+00 : f32
    %7 = vector.broadcast %cst_5 : f32 to vector<8x1xf32>
    %8 = arith.addf %6, %7 : vector<8x1xf32>
    %9 = tpu.reciprocal %8 {approx = true} : vector<8x1xf32> -> vector<8x1xf32>
    %10 = arith.extf %3 : vector<8x128xbf16> to vector<8x128xf32>
    %11 = arith.truncf %10 : vector<8x128xf32> to vector<8x128xbf16>
    %cst_6 = arith.constant dense<0.000000e+00> : vector<8x128xf32>
    %12 = tpu.matmul %1, %11, %cst_6 {dimension_numbers = #tpu.dot_dimension_numbers<[1], [0], [0], [1], [0, 0, 1, 1], [], []>} : vector<8x8xbf16>, vector<8x128xbf16>, vector<8x128xf32> -> vector<8x128xf32>
    %13 = arith.addf %12, %10 : vector<8x128xf32>
    %14 = arith.truncf %13 : vector<8x128xf32> to vector<8x128xbf16>
    %c0_7 = arith.constant 0 : index
    %c0_8 = arith.constant 0 : index
    %c0_9 = arith.constant 0 : index
    %15 = vector.load %arg6[%c0_7, %c0_8, %c0_9] : memref<2x128x128xbf16, #tpu.memory_space<vmem>>, vector<1x128x128xbf16>
    %16 = vector.shape_cast %15 : vector<1x128x128xbf16> to vector<128x128xbf16>
    %cst_10 = arith.constant dense<0.000000e+00> : vector<8x128xf32>
    %17 = tpu.matmul %14, %16, %cst_10 {dimension_numbers = #tpu.dot_dimension_numbers<[1], [0], [0], [1], [0, 0, 1, 1], [], []>} : vector<8x128xbf16>, vector<128x128xbf16>, vector<8x128xf32> -> vector<8x128xf32>
    %c0_11 = arith.constant 0 : index
    %c0_12 = arith.constant 0 : index
    %c0_13 = arith.constant 0 : index
    %18 = vector.load %arg7[%c0_11, %c0_12, %c0_13] : memref<2x1x128xf32, #tpu.memory_space<vmem>>, vector<1x1x128xf32>
    %19 = vector.shape_cast %18 : vector<1x1x128xf32> to vector<1x128xf32>
    %20 = vector.broadcast %19 : vector<1x128xf32> to vector<8x128xf32>
    %21 = arith.addf %17, %20 : vector<8x128xf32>
    %22 = vector.broadcast %9 : vector<8x1xf32> to vector<8x128xf32>
    %23 = arith.mulf %21, %22 : vector<8x128xf32>
    %cst_14 = arith.constant 0.000000e+00 : f32
    %24 = vector.broadcast %cst_14 : f32 to vector<8x128xf32>
    %25 = arith.maximumf %23, %24 : vector<8x128xf32>
    %26 = arith.truncf %25 : vector<8x128xf32> to vector<8x128xbf16>
    %cst_15 = arith.constant dense<0.000000e+00> : vector<8x128xf32>
    %27 = tpu.matmul %1, %26, %cst_15 {dimension_numbers = #tpu.dot_dimension_numbers<[1], [0], [0], [1], [0, 0, 1, 1], [], []>} : vector<8x8xbf16>, vector<8x128xbf16>, vector<8x128xf32> -> vector<8x128xf32>
    %28 = arith.addf %27, %25 : vector<8x128xf32>
    %29 = arith.truncf %28 : vector<8x128xf32> to vector<8x128xbf16>
    %c1 = arith.constant 1 : index
    %c0_16 = arith.constant 0 : index
    %c0_17 = arith.constant 0 : index
    %30 = vector.load %arg6[%c1, %c0_16, %c0_17] : memref<2x128x128xbf16, #tpu.memory_space<vmem>>, vector<1x128x128xbf16>
    %31 = vector.shape_cast %30 : vector<1x128x128xbf16> to vector<128x128xbf16>
    %cst_18 = arith.constant dense<0.000000e+00> : vector<8x128xf32>
    %32 = tpu.matmul %29, %31, %cst_18 {dimension_numbers = #tpu.dot_dimension_numbers<[1], [0], [0], [1], [0, 0, 1, 1], [], []>} : vector<8x128xbf16>, vector<128x128xbf16>, vector<8x128xf32> -> vector<8x128xf32>
    %c1_19 = arith.constant 1 : index
    %c0_20 = arith.constant 0 : index
    %c0_21 = arith.constant 0 : index
    %33 = vector.load %arg7[%c1_19, %c0_20, %c0_21] : memref<2x1x128xf32, #tpu.memory_space<vmem>>, vector<1x1x128xf32>
    %34 = vector.shape_cast %33 : vector<1x1x128xf32> to vector<1x128xf32>
    %35 = vector.broadcast %34 : vector<1x128xf32> to vector<8x128xf32>
    %36 = arith.addf %32, %35 : vector<8x128xf32>
    %37 = vector.broadcast %9 : vector<8x1xf32> to vector<8x128xf32>
    %38 = arith.mulf %36, %37 : vector<8x128xf32>
    %cst_22 = arith.constant 0.000000e+00 : f32
    %39 = vector.broadcast %cst_22 : f32 to vector<8x128xf32>
    %40 = arith.maximumf %38, %39 : vector<8x128xf32>
    %c0_23 = arith.constant 0 : index
    %c0_24 = arith.constant 0 : index
    %c0_25 = arith.constant 0 : index
    %41 = vector.load %arg11[%c0_23, %c0_24, %c0_25] : memref<1x8x128xf32, #tpu.memory_space<vmem>>, vector<1x8x128xf32>
    %42 = vector.shape_cast %41 : vector<1x8x128xf32> to vector<8x128xf32>
    %43 = vector.shape_cast %40 : vector<8x128xf32> to vector<1x8x128xf32>
    tpu.vector_store %arg11[%c0_23, %c0_24, %c0_25], %43 {strides = array<i32>} : memref<1x8x128xf32, #tpu.memory_space<vmem>>, vector<1x8x128xf32>,
    %c0_26 = arith.constant 0 : index
    %c0_27 = arith.constant 0 : index
    %44 = vector.load %arg8[%c0_26, %c0_27] : memref<128x128xbf16, #tpu.memory_space<vmem>>, vector<128x128xbf16>
    %cst_28 = arith.constant dense<0.000000e+00> : vector<8x128xf32>
    %45 = tpu.matmul %3, %44, %cst_28 {dimension_numbers = #tpu.dot_dimension_numbers<[1], [0], [0], [1], [0, 0, 1, 1], [], []>} : vector<8x128xbf16>, vector<128x128xbf16>, vector<8x128xf32> -> vector<8x128xf32>
    %c0_29 = arith.constant 0 : index
    %c0_30 = arith.constant 0 : index
    %c0_31 = arith.constant 0 : index
    %46 = vector.load %arg3[%c0_29, %c0_30, %c0_31] : memref<1x8x8xbf16, #tpu.memory_space<vmem>>, vector<1x8x8xbf16>
    %47 = vector.shape_cast %46 : vector<1x8x8xbf16> to vector<8x8xbf16>
    %c0_32 = arith.constant 0 : index
    %c0_33 = arith.constant 0 : index
    %48 = vector.load %arg9[%c0_32, %c0_33] : memref<8x128xbf16, #tpu.memory_space<vmem>>, vector<8x128xbf16>
    %cst_34 = arith.constant dense<0.000000e+00> : vector<8x128xf32>
    %49 = tpu.matmul %47, %48, %cst_34 {dimension_numbers = #tpu.dot_dimension_numbers<[1], [0], [0], [1], [0, 0, 1, 1], [], []>} : vector<8x8xbf16>, vector<8x128xbf16>, vector<8x128xf32> -> vector<8x128xf32>
    %50 = arith.addf %45, %49 : vector<8x128xf32>
    %c0_35 = arith.constant 0 : index
    %c0_36 = arith.constant 0 : index
    %c0_37 = arith.constant 0 : index
    %51 = vector.load %arg4[%c0_35, %c0_36, %c0_37] : memref<1x1x128xf32, #tpu.memory_space<vmem>>, vector<1x1x128xf32>
    %52 = vector.shape_cast %51 : vector<1x1x128xf32> to vector<1x128xf32>
    %53 = vector.broadcast %52 : vector<1x128xf32> to vector<8x128xf32>
    %54 = arith.addf %50, %53 : vector<8x128xf32>
    %55 = math.tanh %54 : vector<8x128xf32>
    %c0_38 = arith.constant 0 : index
    %c0_39 = arith.constant 0 : index
    %56 = vector.load %arg10[%c0_38, %c0_39] : memref<1x128xf32, #tpu.memory_space<vmem>>, vector<1x128xf32>
    %57 = vector.broadcast %56 : vector<1x128xf32> to vector<8x128xf32>
    %58 = arith.mulf %55, %57 : vector<8x128xf32>
    %cst_40 = arith.constant dense<0.000000e+00> : vector<8xf32>
    %59 = vector.multi_reduction <add>, %58, %cst_40 [1] : vector<8x128xf32> to vector<8xf32>
    %60 = vector.shape_cast %59 : vector<8xf32> to vector<8x1xf32>
    %c0_41 = arith.constant 0 : index
    %c0_42 = arith.constant 0 : index
    %c0_43 = arith.constant 0 : index
    %61 = vector.load %arg5[%c0_41, %c0_42, %c0_43] : memref<1x8x1xf32, #tpu.memory_space<vmem>>, vector<1x8x1xf32>
    %62 = vector.shape_cast %61 : vector<1x8x1xf32> to vector<8x1xf32>
    %63 = arith.addf %60, %62 : vector<8x1xf32>
    %cst_44 = arith.constant dense<0xFF800000> : vector<1xf32>
    %64 = vector.multi_reduction <maximumf>, %63, %cst_44 [0] : vector<8x1xf32> to vector<1xf32>
    %65 = vector.shape_cast %64 : vector<1xf32> to vector<1x1xf32>
    %66 = vector.broadcast %65 : vector<1x1xf32> to vector<8x1xf32>
    %67 = arith.subf %63, %66 : vector<8x1xf32>
    %68 = math.exp %67 : vector<8x1xf32>
    %cst_45 = arith.constant dense<0.000000e+00> : vector<1xf32>
    %69 = vector.multi_reduction <add>, %68, %cst_45 [0] : vector<8x1xf32> to vector<1xf32>
    %70 = vector.shape_cast %69 : vector<1xf32> to vector<1x1xf32>
    %71 = vector.broadcast %70 : vector<1x1xf32> to vector<8x1xf32>
    %72 = arith.divf %68, %71 : vector<8x1xf32>
    %73 = vector.broadcast %72 : vector<8x1xf32> to vector<8x128xf32>
    %74 = arith.mulf %73, %40 : vector<8x128xf32>
    %cst_46 = arith.constant dense<0.000000e+00> : vector<128xf32>
    %75 = vector.multi_reduction <add>, %74, %cst_46 [0] : vector<8x128xf32> to vector<128xf32>
    %76 = vector.shape_cast %75 : vector<128xf32> to vector<1x128xf32>
    %c0_47 = arith.constant 0 : index
    %c0_48 = arith.constant 0 : index
    %c0_49 = arith.constant 0 : index
    %77 = vector.load %arg12[%c0_47, %c0_48, %c0_49] : memref<1x1x128xf32, #tpu.memory_space<vmem>>, vector<1x1x128xf32>
    %78 = vector.shape_cast %77 : vector<1x1x128xf32> to vector<1x128xf32>
    %79 = vector.shape_cast %76 : vector<1x128xf32> to vector<1x1x128xf32>
    tpu.vector_store %arg12[%c0_47, %c0_48, %c0_49], %79 {strides = array<i32>} : memref<1x1x128xf32, #tpu.memory_space<vmem>>, vector<1x1x128xf32>,
    return
  }
  func.func @transform_0(%arg0: i32) -> (i32, i32, i32) {
    %c0_i32 = arith.constant 0 : i32
    %c0_i32_0 = arith.constant 0 : i32
    %c0_i32_1 = arith.constant 0 : i32
    return %arg0, %c0_i32, %c0_i32_0 : i32, i32, i32
  }
  func.func @transform_1(%arg0: i32) -> (i32, i32, i32) {
    %c0_i32 = arith.constant 0 : i32
    %c0_i32_0 = arith.constant 0 : i32
    %c0_i32_1 = arith.constant 0 : i32
    return %arg0, %c0_i32, %c0_i32_0 : i32, i32, i32
  }
  func.func @transform_2(%arg0: i32) -> (i32, i32, i32) {
    %c0_i32 = arith.constant 0 : i32
    %c0_i32_0 = arith.constant 0 : i32
    %c0_i32_1 = arith.constant 0 : i32
    return %arg0, %c0_i32, %c0_i32_0 : i32, i32, i32
  }
  func.func @transform_3(%arg0: i32) -> (i32, i32, i32) {
    %c0_i32 = arith.constant 0 : i32
    %c0_i32_0 = arith.constant 0 : i32
    %c0_i32_1 = arith.constant 0 : i32
    return %arg0, %c0_i32, %c0_i32_0 : i32, i32, i32
  }
  func.func @transform_4(%arg0: i32) -> (i32, i32, i32) {
    %c0_i32 = arith.constant 0 : i32
    %c0_i32_0 = arith.constant 0 : i32
    %c0_i32_1 = arith.constant 0 : i32
    return %arg0, %c0_i32, %c0_i32_0 : i32, i32, i32
  }
  func.func @transform_5(%arg0: i32) -> (i32, i32, i32) {
    %c0_i32 = arith.constant 0 : i32
    %c0_i32_0 = arith.constant 0 : i32
    %c0_i32_1 = arith.constant 0 : i32
    %c0_i32_2 = arith.constant 0 : i32
    return %c0_i32, %c0_i32_0, %c0_i32_1 : i32, i32, i32
  }
  func.func @transform_6(%arg0: i32) -> (i32, i32, i32) {
    %c0_i32 = arith.constant 0 : i32
    %c0_i32_0 = arith.constant 0 : i32
    %c0_i32_1 = arith.constant 0 : i32
    %c0_i32_2 = arith.constant 0 : i32
    return %c0_i32, %c0_i32_0, %c0_i32_1 : i32, i32, i32
  }
  func.func @transform_7(%arg0: i32) -> (i32, i32) {
    %c0_i32 = arith.constant 0 : i32
    %c0_i32_0 = arith.constant 0 : i32
    %c0_i32_1 = arith.constant 0 : i32
    return %c0_i32, %c0_i32_0 : i32, i32
  }
  func.func @transform_8(%arg0: i32) -> (i32, i32) {
    %c0_i32 = arith.constant 0 : i32
    %c0_i32_0 = arith.constant 0 : i32
    %c0_i32_1 = arith.constant 0 : i32
    return %c0_i32, %c0_i32_0 : i32, i32
  }
  func.func @transform_9(%arg0: i32) -> (i32, i32) {
    %c0_i32 = arith.constant 0 : i32
    %c0_i32_0 = arith.constant 0 : i32
    %c0_i32_1 = arith.constant 0 : i32
    return %c0_i32, %c0_i32_0 : i32, i32
  }
  func.func @transform_10(%arg0: i32) -> (i32, i32, i32) {
    %c0_i32 = arith.constant 0 : i32
    %c0_i32_0 = arith.constant 0 : i32
    %c0_i32_1 = arith.constant 0 : i32
    return %arg0, %c0_i32, %c0_i32_0 : i32, i32, i32
  }
  func.func @transform_11(%arg0: i32) -> (i32, i32, i32) {
    %c0_i32 = arith.constant 0 : i32
    %c0_i32_0 = arith.constant 0 : i32
    %c0_i32_1 = arith.constant 0 : i32
    return %arg0, %c0_i32, %c0_i32_0 : i32, i32, i32
  }
}

</mosaic_0001>

<bundles_post_ra>
// kernel: my_block_forward.3
= control target key start
LH: loop header
LB: loop body
LE: loop exit
PB: predicated region body
PF: predicated region fallthrough
CT: control target
= control target key end

     0   :  { %s1880_s0 = inlined_call_operand.vmem [shape: bf16[2,8,8], index: 0, kind: input, shape index: {}]   ;;  %s1881_s1 = inlined_call_operand.vmem [shape: bf16[2,8,128], index: 1, kind: input, shape index: {}]   ;;  %s1882_s2 = inlined_call_operand.vmem [shape: bf16[2,8,8], index: 2, kind: input, shape index: {}]   ;;  %s1883_s3 = inlined_call_operand.vmem [shape: f32[2,1,128], index: 3, kind: input, shape index: {}]   ;;  %s1884_s4 = inlined_call_operand.vmem [shape: f32[2,8,1], index: 4, kind: input, shape index: {}]   ;;  %s1885_s5 = inlined_call_operand.vmem [shape: bf16[2,128,128], index: 5, kind: input, shape index: {}]   ;;  %s1886_s6 = inlined_call_operand.vmem [shape: f32[2,1,128], index: 6, kind: input, shape index: {}]   ;;  %s1887_s7 = inlined_call_operand.vmem [shape: bf16[128,128], index: 7, kind: input, shape index: {}]   ;;  %s1888_s8 = inlined_call_operand.vmem [shape: bf16[8,128], index: 8, kind: input, shape index: {}]   ;;  %s1889_s9 = inlined_call_operand.vmem [shape: f32[1,128], index: 9, kind: input, shape index: {}]   ;;  %s1890_s10 = inlined_call_operand.hbm [shape: f32[2,8,128], index: 10, kind: output, shape index: {0}]   ;;  %s1891_s11 = inlined_call_operand.hbm [shape: f32[2,1,128], index: 11, kind: output, shape index: {1}]  }
   0x1   :  { %1892 = sst [smem:[#allocation8_spill]] %s1880_s0 }
   0x2   :  { %1893 = sst [smem:[#allocation9_spill]] %s1881_s1 }
   0x3   :  { %17 = vsyncpa [#allocation3], 0 }
   0x4   :  { %19 = vsyncpa [#allocation3 + $0x1], 0 }
   0x5   :  { %20 = vsyncpa [#allocation5], 0 }
   0x6   :  { %22 = vsyncpa [#allocation5 + $0x1], 0  ;;  %s1574_s17 = smov 0   ;;  %s1576_s18 = smov 0  }
   0x7   :  { %s1578_s19 = smov 0   ;;  %s1580_s20 = smov 0  }
   0x8 LB: > { %s1595_s21 = sadd.s32 4294967295, %s1507_s20   ;;  %s1159_s22 = sadd.s32 4294967294, %s1507_s20   ;;  %s1507_s20 = sphi %s1580_s20, %s1901_s20   ;;  %s1503_s19 = sphi %s1578_s19, %s1900_s19   ;;  %s1499_s18 = sphi %s1576_s18, %s1899_s18   ;;  %s1495_s17 = sphi %s1574_s17, %s1898_s17  }
   0x9   : > { %s1599_s23 = sadd.s32 1, %s1507_s20   ;;  %s270_s24 = sadd.s32 1, %s1503_s19 }
   0xa   : > { %s267_s25 = ssub.s32 %s1507_s20, %s1599_s23  ;;  %p280_p0 = scmp.ne.s32.totalorder %s1503_s19, %s1499_s18 }
   0xb   : > { %p268_p1 = scmp.eq.s32.totalorder %s267_s25, 0  ;;  %p281_p2 = scmp.eq.s32.totalorder %s1595_s21, 1 }
   0xc   : > { %p286_p3 = scmp.ne.s32.totalorder %s1499_s18, %s1495_s17  ;;  %p287_p4 = scmp.eq.s32.totalorder %s1159_s22, 1 }
   0xd   : > { %s1610_s26 = scalar_select %p268_p1, %s1503_s19, %s270_s24  }
   0xe   : > { %p1612_p5 = por %p281_p2, %p280_p0  ;;  %p1616_p6 = por %p287_p4, %p286_p3 }
   0xf   : > { %p1162_p7 = scmp.ge.s32.totalorder %s1507_s20, 1  ;;  %p380_p8 = scmp.lt.s32.totalorder %s1507_s20, 3 }
  0x11   : > { %p381_p9 = pnand %p1162_p7, %p380_p8 }
  0x12   : > { %p438_p10 = scmp.lt.s32.totalorder (!%p381_p9), %s1595_s21, 1  ;;  %v1381_v0 = vld [vmem:[%s1885_s5] sm:$0xff] (!%p381_p9)   ;;  %v1509_v1 = vmov (!%p381_p9), 0.0   ;;  %vm1510_vm0 = vmmov (!%p381_p9), 0   ;;  %v1382_v2 = vld [vmem:[%s1885_s5 + $0x8] sm:$0xff] (!%p381_p9)   ;;  %vm471_vm1 = vcmask (!%p381_p9), 1043456  }
  0x13   : > { %384 = sbr.rel (%p381_p9) target bundleno = 1282 (0x502), region = 60  ;;  %1254 = vmatprep.subr.bf16.mxu0 (!%p381_p9), %v1509_v1  ;;  %1256 = vmatprep.mubr.msk.bf16.mxu0 (!%p381_p9), %vm1510_vm0, %v1509_v1  ;;  %s1896_s1 = sld [smem:[#allocation9_spill]] (!%p381_p9)  ;;  %vm461_vm2 = vcmask (!%p381_p9), 64512   ;;  %v1383_v5 = vld [vmem:[%s1885_s5 + $0x10] sm:$0xff] (!%p381_p9)   ;;  %v1384_v7 = vld [vmem:[%s1885_s5 + $0x18] sm:$0xff] (!%p381_p9)   ;;  %v1385_v8 = vld [vmem:[%s1885_s5 + $0x20] sm:$0xff] (!%p381_p9)  }
  0x14   : > { %1260 = vmatprep.subr.bf16.mxu1 (!%p381_p9), %v1509_v1  ;;  %1276 = vmatprep.mubr.msk.bf16.mxu1 (!%p381_p9), %vm1510_vm0, %v1509_v1  ;;  %s1897_s0 = sld [smem:[#allocation8_spill]] (!%p381_p9)  ;;  %v1386_v9 = vld [vmem:[%s1885_s5 + $0x28] sm:$0xff] (!%p381_p9)   ;;  %v1387_v10 = vld [vmem:[%s1885_s5 + $0x30] sm:$0xff] (!%p381_p9)   ;;  %v1388_v11 = vld [vmem:[%s1885_s5 + $0x38] sm:$0xff] (!%p381_p9)   ;;  %s1782_s25 = sand.u32 (!%p381_p9), 1, %s1499_s18   ;;  %vm963_vm3 = vcmask (!%p381_p9), 7168  }
  0x15   : > { %1261 = vmatpush3.bf16.msra.mxu1 (!%p381_p9), %v1381_v0  ;;  %v1392_v21 = vld [vmem:[%s1887_s7] sm:$0xff] (!%p381_p9)   ;;  %v1394_v22 = vld [vmem:[%s1887_s7 + $0x8] sm:$0xff] (!%p381_p9)   ;;  %v1396_v23 = vld [vmem:[%s1887_s7 + $0x10] sm:$0xff] (!%p381_p9)   ;;  %s1163_s29 = sshll.u32 (!%p381_p9), %s1782_s25, 3 }
  0x16   : > { %1262 = vmatprep.subr.bf16.mxu1 (!%p381_p9), %v1509_v1  ;;  %v1398_v24 = vld [vmem:[%s1887_s7 + $0x18] sm:$0xff] (!%p381_p9)   ;;  %v1400_v25 = vld [vmem:[%s1887_s7 + $0x20] sm:$0xff] (!%p381_p9)   ;;  %v1390_v40 = vld [vmem:[%s1885_s5 + $0x48] sm:$0xff] (!%p381_p9)   ;;  %s1793_s14 = scalar_lea.vmem (!%p381_p9), [#allocation2], %s1163_s29  ;;  %s997_s29 = scalar_lea.sflag (!%p381_p9), [#allocation3], %s1782_s25 }
  0x17   : > { %v1169_v28 = vld [vmem:[%s1886_s6] ss:$0 sm:$0xff] (!%p381_p9)  ;;  %v1391_v41 = vld [vmem:[%s1885_s5 + $0x50] sm:$0xff] (!%p381_p9)   ;;  %v1393_v42 = vld [vmem:[%s1885_s5 + $0x58] sm:$0xff] (!%p381_p9)  }
  0x18   : > { %v1389_v39 = vld [vmem:[%s1885_s5 + $0x40] sm:$0xff] (!%p381_p9)   ;;  %v1397_v44 = vld [vmem:[%s1885_s5 + $0x68] sm:$0xff] (!%p381_p9)   ;;  %v1399_v45 = vld [vmem:[%s1885_s5 + $0x70] sm:$0xff] (!%p381_p9)  }
  0x19   : > { %1263 = vmatpush3.bf16.msra.mxu1 (!%p381_p9), %v1382_v2  ;;  %v1395_v43 = vld [vmem:[%s1885_s5 + $0x60] sm:$0xff] (!%p381_p9)   ;;  %v1402_v46 = vld [vmem:[%s1887_s7 + $0x28] sm:$0xff] (!%p381_p9)   ;;  %v1401_v47 = vld [vmem:[%s1885_s5 + $0x78] sm:$0xff] (!%p381_p9)  }
  0x1a   : > { %s1630_s12 = scalar_select %p438_p10, %s1595_s21, 1  ;;  %1264 = vmatprep.subr.bf16.mxu1 %v1509_v1  ;;  %v1403_v48 = vld [vmem:[%s1887_s7 + $0x30] sm:$0xff]   ;;  %v1404_v49 = vld [vmem:[%s1887_s7 + $0x38] sm:$0xff]   ;;  %v807_v51 = vld [vmem:[%s1888_s8] sm:$0xf] }
  0x1b   : > { %v812_v57 = vsel %vm471_vm1, %v807_v51, 0  ;;  %v1196_v63 = vld [vmem:[%s1886_s6 + $0x1] ss:$0 sm:$0xff] }
  0x1c   : > { %s1639_s15 = sshll.u32 %s1630_s12, 2  ;;  %s452_s13 = scalar_lea.vmem %s1883_s3, %s1630_s12 }
  0x1d   : > { %s445_s24 = scalar_lea.vmem %s1896_s1, %s1639_s15  ;;  %s441_s30 = scalar_lea.vmem %s1897_s0, %s1639_s15  ;;  %1265 = vmatpush3.bf16.msra.mxu1 %v1383_v5 }
  0x1e   : > { %v1650_v3 = vld [vmem:[%s445_s24] sm:$0xf]  ;;  %1266 = vmatprep.subr.bf16.mxu1 %v1509_v1  ;;  %s449_s16 = scalar_lea.vmem %s1882_s2, %s1639_s15  ;;  %s1167_s24 = sshll.u32 %s1630_s12, 3 }
  0x1f   : > { %v473_v4 = vsel %vm471_vm1, %v1650_v3, 0  ;;  %v1657_v6 = vld [vmem:[%s441_s30] sm:$0xf]  ;;  %v467_v14 = vunpack.c.l.bf16 %v1650_v3  ;;  %s456_s30 = scalar_lea.vmem %s1884_s4, %s1167_s24  ;;  %s1217_s12 = sshll.u32 %s1595_s21, 7 }
  0x20   : > { %1255 = vmatpush3.bf16.msra.mxu0 %v473_v4  ;;  %v460_v12 = vunpack.c.l.bf16 %v1657_v6  ;;  %v806_v58 = vld [vmem:[%s449_s16] sm:$0xf]  ;;  %s1809_s22 = scalar_lea.hbm %s1890_s10, %s1217_s12  ;;  %s1014_s24 = sshll.u32 %s1793_s14, 4  ;;  %s1015_s24 = int_to_ptr.vmem [resolvable:$true] %s1014_s24 }
  0x21   : > { %1280 = vmatprep.subr.bf16.mxu0 %v1509_v1  ;;  %1267 = vmatpush3.bf16.msra.mxu1 %v1384_v7  ;;  %s1413_s15 = scalar_lea.vmem %s1015_s24, 128 }
  0x22   : > { %1268 = vmatprep.subr.bf16.mxu1 %v1509_v1  ;;  %v462_v13 = vsel %vm461_vm2, %v460_v12, 0.0  ;;  %p1414_p11 = scmp.ne.s32.totalorder %s1015_s24, %s1413_s15 }
  0x23   : > { %1257 = vmatmul.mubr.msk.bf16.vlgmr.msra.gmra.mrb[0].mxu0 %vm461_vm2, %v1657_v6  ;;  %463 = vadd.xlane.f32.xlu0 %v462_v13 }
  0x24   : > { %1282 = vmatprep.mubr.msk.bf16.mxu0 %vm1510_vm0, %v1509_v1  ;;  %p1415_p12 = pnand %p1414_p11, %p1612_p5 }
  0x25   : > { %1269 = vmatpush3.bf16.msra.mxu1 %v1385_v8  ;;  %v1214_v8 = vld [vmem:[%s452_s13] ss:$0 sm:$0xff] }
  0x26   : > { %1270 = vmatprep.subr.bf16.mxu1 %v1509_v1  ;;  %p1416_p13 = pneg %p1415_p12 }
  0x29   : > { %1271 = vmatpush3.bf16.msra.mxu1 %v1386_v9 }
  0x2a   : > { %1272 = vmatprep.subr.bf16.mxu1 %v1509_v1 }
  0x2d   : > { %1273 = vmatpush3.bf16.msra.mxu1 %v1387_v10 }
  0x2e   : > { %1274 = vmatprep.subr.bf16.mxu1 %v1509_v1 }
  0x31   : > { %1275 = vmatpush3.bf16.msra.mxu1 %v1388_v11 }
  0x32   : > { %1312 = vmatprep.subr.bf16.mxu1 %v1509_v1 }
  0xb0   : > { %v464_v26 = vpop.xlane.xlu0 %463 }
  0xb1   : > { %v465_v27 = vadd.f32 1.0, %v464_v26 }
  0xb3   : > { %1405 = vrcp.f32 %v465_v27 }
  0xbd   : > { %v1714_v29 = vpop.eup %1405 }
  0xf6   : > { %v509_v15 = vpop.f32.mrb[0].mxu0 }
  0xf7   : > { %v510_v16 = vadd.f32 %v509_v15, %v467_v14  ;;  %v1258_v17 = vpop.f32.mrb[1].mxu0  ;;  %v1215_v14 = vld [vmem:[%s1889_s9] ss:$0 sm:$0xff] }
  0xf8   : > { %v512_v18 = vpop.f32.mrb[2].mxu0  ;;  %v1511_v17 = vmov 0  }
  0xf9   : > { %v515_v19 = vpack.c.bf16 %v510_v16, %v510_v16  ;;  %v1259_v20 = vpop.f32.mrb[3].mxu0  ;;  %1379 = vset.pattern.permute.xlu1 %v1511_v17  ;;  %1380 = vset.pattern.permute.xlu0 %v1511_v17  ;;  %v961_v18 = vld [vmem:[%s456_s30] sm:$0xff]  ;;  %s1512_s30 = smov [#allocation2]  }
  0xfa   : > { %s1417_s0 = sshll.u32 %s1512_s30, 4  ;;  %s1418_s0 = int_to_ptr.vmem [resolvable:$false] %s1417_s0 }
  0xfb   : > { %1277 = vmatmul.mubr.bf16.vlgmr.msra.gmra.mrb[0].mxu1 %v515_v19  ;;  %s1419_s1 = scalar_lea.vmem %s1418_s0, 256  ;;  %p1420_p0 = scmp.lt.s32.totalorder %s1015_s24, %s1418_s0 }
  0xfc   : > { %1328 = vmatprep.mubr.msk.bf16.mxu1 %vm1510_vm0, %v1509_v1  ;;  %1313 = vmatpush3.bf16.msra.mxu1 %v1392_v21  ;;  %p1421_p1 = scmp.lt.s32.totalorder %s1419_s1, %s1413_s15 }
  0xfd   : > { %1314 = vmatprep.subr.bf16.mxu1 %v1509_v1 }
  0xfe   : > { %p1422_p2 = por %p1421_p1, %p1420_p0 }
 0x100   : > { %1315 = vmatpush3.bf16.msra.mxu1 %v1394_v22  ;;  %p1423_p3 = pnand %p1422_p2, %p1416_p13 }
 0x101   : > { %1316 = vmatprep.subr.bf16.mxu1 %v1509_v1 }
 0x104   : > { %1317 = vmatpush3.bf16.msra.mxu1 %v1396_v23 }
 0x105   : > { %1318 = vmatprep.subr.bf16.mxu1 %v1509_v1 }
 0x108   : > { %1319 = vmatpush3.bf16.msra.mxu1 %v1398_v24 }
 0x109   : > { %1320 = vmatprep.subr.bf16.mxu1 %v1509_v1 }
 0x10c   : > { %1321 = vmatpush3.bf16.msra.mxu1 %v1400_v25 }
 0x10d   : > { %1322 = vmatprep.subr.bf16.mxu1 %v1509_v1 }
 0x110   : > { %1323 = vmatpush3.bf16.msra.mxu1 %v1402_v46 }
 0x111   : > { %1324 = vmatprep.subr.bf16.mxu1 %v1509_v1 }
 0x114   : > { %1325 = vmatpush3.bf16.msra.mxu1 %v1403_v48 }
 0x115   : > { %1326 = vmatprep.subr.bf16.mxu1 %v1509_v1 }
 0x118   : > { %1327 = vmatpush3.bf16.msra.mxu1 %v1404_v49 }
 0x11b   : > { %1329 = vmatmul.mubr.bf16.vlgmr.msra.gmra.mrb[4].mxu1 %v1650_v3 }
 0x1ce   : > { %v621_v30 = vpop.f32.mrb[0].mxu1 }
 0x1cf   : > { %v622_v31 = vadd.f32 %v1169_v28, %v621_v30  ;;  %v1278_v32 = vpop.f32.mrb[1].mxu1 }
 0x1d0   : > { %v624_v33 = vpop.f32.mrb[2].mxu1 }
 0x1d1   : > { %v627_v34 = vmul.f32 %v1714_v29, %v622_v31  ;;  %v1279_v35 = vpop.f32.mrb[3].mxu1 }
 0x1d3   : > { %v628_v36 = vmax.f32 %v627_v34, 0.0 }
 0x1d5   : > { %v629_v37 = vpack.c.bf16 %v628_v36, %v628_v36 }
 0x1d7   : > { %v631_v38 = vsel %vm471_vm1, %v629_v37, 0 }
 0x1d8   : > { %1281 = vmatpush3.bf16.msra.mxu0 %v631_v38 }
 0x1d9   : > { %1286 = vmatprep.subr.bf16.mxu0 %v1509_v1 }
 0x1db   : > { %1283 = vmatmul.mubr.msk.bf16.vlgmr.msra.gmra.mrb[4].mxu0 %vm461_vm2, %v1657_v6 }
 0x1dc   : > { %1287 = vmatpush3.bf16.msra.mxu0 %v1389_v39  ;;  %1302 = vmatprep.mubr.msk.bf16.mxu0 %vm1510_vm0, %v1509_v1 }
 0x1dd   : > { %1288 = vmatprep.subr.bf16.mxu0 %v1509_v1 }
 0x1e0   : > { %1289 = vmatpush3.bf16.msra.mxu0 %v1390_v40 }
 0x1e1   : > { %1290 = vmatprep.subr.bf16.mxu0 %v1509_v1 }
 0x1e4   : > { %1291 = vmatpush3.bf16.msra.mxu0 %v1391_v41 }
 0x1e5   : > { %1292 = vmatprep.subr.bf16.mxu0 %v1509_v1 }
 0x1e8   : > { %1293 = vmatpush3.bf16.msra.mxu0 %v1393_v42 }
 0x1e9   : > { %1294 = vmatprep.subr.bf16.mxu0 %v1509_v1 }
 0x1ec   : > { %1295 = vmatpush3.bf16.msra.mxu0 %v1395_v43 }
 0x1ed   : > { %1296 = vmatprep.subr.bf16.mxu0 %v1509_v1 }
 0x1ee   : > { %v936_v59 = vpop.f32.mrb[4].mxu1 }
 0x1ef   : > { %v1330_v60 = vpop.f32.mrb[5].mxu1 }
 0x1f0   : > { %1297 = vmatpush3.bf16.msra.mxu0 %v1397_v44  ;;  %v939_v61 = vpop.f32.mrb[6].mxu1 }
 0x1f1   : > { %1298 = vmatprep.subr.bf16.mxu0 %v1509_v1  ;;  %v1331_v62 = vpop.f32.mrb[7].mxu1 }
 0x1f4   : > { %1299 = vmatpush3.bf16.msra.mxu0 %v1399_v45 }
 0x1f5   : > { %1300 = vmatprep.subr.bf16.mxu0 %v1509_v1 }
 0x1f8   : > { %1301 = vmatpush3.bf16.msra.mxu0 %v1401_v47 }
 0x1f9   : > { %1306 = vmatprep.subr.bf16.mxu0 %v1509_v1 }
 0x2ae   : > { %v667_v50 = vpop.f32.mrb[4].mxu0 }
 0x2af   : > { %v668_v52 = vadd.f32 %v667_v50, %v628_v36  ;;  %v1284_v53 = vpop.f32.mrb[5].mxu0 }
 0x2b0   : > { %v670_v54 = vpop.f32.mrb[6].mxu0 }
 0x2b1   : > { %v673_v55 = vpack.c.bf16 %v668_v52, %v668_v52  ;;  %v1285_v56 = vpop.f32.mrb[7].mxu0 }
 0x2b3   : > { %1303 = vmatmul.mubr.bf16.vlgmr.msra.gmra.mrb[8].mxu0 %v673_v55 }
 0x2b4   : > { %1307 = vmatpush3.bf16.msra.mxu0 %v812_v57  ;;  %1308 = vmatprep.mubr.msk.bf16.mxu0 %vm1510_vm0, %v1509_v1 }
 0x2bb   : > { %1309 = vmatmul.mubr.msk.bf16.vlgmr.msra.gmra.mrb[12].mxu0 %vm461_vm2, %v806_v58 }
 0x386   : > { %v781_v0 = vpop.f32.mrb[8].mxu0 }
 0x387   : > { %v782_v1 = vadd.f32 %v1196_v63, %v781_v0  ;;  %v1304_v2 = vpop.f32.mrb[9].mxu0 }
 0x388   : > { %v784_v3 = vpop.f32.mrb[10].mxu0 }
 0x389   : > { %v1786_v4 = vmul.f32 %v1714_v29, %v782_v1  ;;  %v1305_v5 = vpop.f32.mrb[11].mxu0 }
 0x38b   : > { %v788_v6 = vmax.f32 %v1786_v4, 0.0 }
 0x38d   : > { %789 = vst [vmem:[%s1793_s14] sm:$0xff] %v788_v6 }
 0x38e   : > { %v848_v7 = vpop.f32.mrb[12].mxu0 }
 0x38f   : > { %v937_v9 = vadd.f32 %v936_v59, %v848_v7  ;;  %v1310_v10 = vpop.f32.mrb[13].mxu0 }
 0x390   : > { %v851_v11 = vpop.f32.mrb[14].mxu0 }
 0x391   : > { %v949_v12 = vadd.f32 %v1214_v8, %v937_v9  ;;  %v1311_v13 = vpop.f32.mrb[15].mxu0 }
 0x393   : > { %1407 = vtanh.f32 %v949_v12 }
 0x39d   : > { %v1408_v15 = vpop.eup %1407 }
 0x39e   : > { %v958_v16 = vmul.f32 %v1408_v15, %v1215_v14 }
 0x3a0   : > { %959 = vadd.xlane.f32.xlu0 %v958_v16 }
 0x42d   : > { %v960_v19 = vpop.xlane.xlu0 %959 }
 0x42e   : > { %v962_v20 = vadd.f32 %v961_v18, %v960_v19 }
 0x430   : > { %v964_v21 = vsel %vm963_vm3, %v962_v20, -inf }
 0x431   : > { %v965_v22 = vrot.slane %v964_v21, 4 }
 0x433   : > { %v966_v23 = vmax.f32 %v964_v21, %v965_v22 }
 0x435   : > { %v967_v24 = vrot.slane %v966_v23, 2 }
 0x437   : > { %v968_v25 = vmax.f32 %v966_v23, %v967_v24 }
 0x439   : > { %v969_v26 = vrot.slane %v968_v25, 1 }
 0x43b   : > { %v970_v27 = vmax.f32 %v968_v25, %v969_v26 }
 0x43d   : > { %v971_v28 = vsub.f32 %v962_v20, %v970_v27 }
 0x43f   : > { %v972_v29 = vmul.f32 1.442695, %v971_v28 }
 0x441   : > { %1409 = vpow2.f32 %v972_v29 }
 0x44b   : > { %v1410_v30 = vpop.eup %1409 }
 0x44c   : > { %v974_v31 = vsel %vm963_vm3, %v1410_v30, 0.0 }
 0x44d   : > { %v975_v32 = vrot.slane %v974_v31, 4 }
 0x44f   : > { %v976_v33 = vadd.f32 %v975_v32, %v974_v31 }
 0x451   : > { %v977_v34 = vrot.slane %v976_v33, 2 }
 0x453   : > { %v978_v35 = vadd.f32 %v977_v34, %v976_v33 }
 0x455   : > { %v979_v36 = vrot.slane %v978_v35, 1 }
 0x457   : > { %v980_v37 = vadd.f32 %v979_v36, %v978_v35 }
 0x459   : > { %1411 = vrcp.f32 %v980_v37 }
 0x463   : > { %v1412_v38 = vpop.eup %1411 }
 0x464   : > { %v982_v39 = vmul.f32 %v1412_v38, %v1410_v30 }
 0x466   : > { %985 = vperm.xlu1 %1379, %v982_v39  }
 0x467   : > { %1426 = shalt.err (!%p1423_p3)
}
 0x468   : > { %s1427_s14 = scalar_lea.hbm %s1809_s22, 128  ;;  %s1431_s16 = scalar_lea.hbm %s1890_s10, 256 }
 0x469   : > { %p1428_p4 = scmp.ne.s32.totalorder %s1809_s22, %s1427_s14  ;;  %p1432_p9 = scmp.lt.u32.totalorder %s1809_s22, %s1890_s10 }
 0x46a   : > { %p1433_p10 = scmp.lt.u32.totalorder %s1431_s16, %s1427_s14  ;;  %p1435_p12 = scmp.lt.u32.totalorder %s1427_s14, %s1809_s22 }
 0x46b   : > { %p1429_p7 = pnand %p1428_p4, %p1612_p5 }
 0x46c   : > { %p1434_p11 = por %p1433_p10, %p1432_p9 }
 0x46d   : > { %p1430_p8 = pneg %p1429_p7 }
 0x46e   : > { %p1436_p13 = por %p1435_p12, %p1434_p11 }
 0x470   : > { %p1437_p0 = pnand %p1436_p13, %p1430_p8 }
 0x472   : > { %1440 = shalt.err (!%p1437_p0)
}
 0x473   : > { %1332 = dma.vmem_to_hbm [thread:$0]  (%p1612_p5), %s1015_s24, 128, %s1809_s22, %s997_s29  }
 0x474   : > { %s1218_s1 = sshll.u32 %s1595_s21, 4  ;;  %s437_s15 = scalar_lea.vmem [#allocation4], %s1782_s25 }
 0x475   : > { %s1027_s14 = sshll.u32 %s437_s15, 4  ;;  %s1837_s16 = scalar_lea.hbm %s1891_s11, %s1218_s1  ;;  %s1839_s14 = int_to_ptr.vmem [resolvable:$true] %s1027_s14 }
 0x476   : > { %s1002_s22 = scalar_lea.sflag [#allocation5], %s1782_s25  ;;  %s1441_s24 = scalar_lea.vmem %s1839_s14, 16 }
 0x477   : > { %p1442_p1 = scmp.ne.s32.totalorder %s1839_s14, %s1441_s24  ;;  %s1513_s21 = smov [#allocation4]  }
 0x478   : > { %s1445_s29 = sshll.u32 %s1513_s21, 4  ;;  %s1446_s29 = int_to_ptr.vmem [resolvable:$false] %s1445_s29 }
 0x479   : > { %p1443_p2 = pnand %p1442_p1, %p1612_p5  ;;  %s1447_s30 = scalar_lea.vmem %s1446_s29, 32 }
 0x47a   : > { %p1448_p4 = scmp.lt.s32.totalorder %s1839_s14, %s1446_s29  ;;  %p1449_p7 = scmp.lt.s32.totalorder %s1447_s30, %s1441_s24 }
 0x47b   : > { %p1444_p3 = pneg %p1443_p2 }
 0x47c   : > { %p1450_p8 = por %p1449_p7, %p1448_p4 }
 0x47e   : > { %p1451_p9 = pnand %p1450_p8, %p1444_p3 }
 0x4e5   : > { %v986_v40 = vpop.permute.xlu1 %985 }
 0x4e6   : > { %v988_v41 = vmul.f32 %v986_v40, %v788_v6 }
 0x4e8   : > { %v989_v42 = vrot.slane %v988_v41, 4 }
 0x4ea   : > { %v990_v43 = vadd.f32 %v989_v42, %v988_v41 }
 0x4ec   : > { %v991_v44 = vrot.slane %v990_v43, 2 }
 0x4ee   : > { %v992_v45 = vadd.f32 %v991_v44, %v990_v43 }
 0x4f0   : > { %v993_v46 = vrot.slane %v992_v45, 1 }
 0x4f2   : > { %v994_v47 = vadd.f32 %v993_v46, %v992_v45 }
 0x4f4   : > { %995 = vst [vmem:[%s437_s15] sm:$0x1] %v994_v47 }
 0x4f5   : > { %1454 = shalt.err (!%p1451_p9)
}
 0x4f6   : > { %s1455_s25 = scalar_lea.hbm %s1837_s16, 16  ;;  %s1459_s15 = scalar_lea.hbm %s1891_s11, 32 }
 0x4f7   : > { %p1456_p10 = scmp.ne.s32.totalorder %s1837_s16, %s1455_s25  ;;  %p1460_p13 = scmp.lt.u32.totalorder %s1837_s16, %s1891_s11 }
 0x4f8   : > { %p1461_p0 = scmp.lt.u32.totalorder %s1459_s15, %s1455_s25  ;;  %p1463_p2 = scmp.lt.u32.totalorder %s1455_s25, %s1837_s16 }
 0x4f9   : > { %p1457_p11 = pnand %p1456_p10, %p1612_p5 }
 0x4fa   : > { %p1462_p1 = por %p1461_p0, %p1460_p13 }
 0x4fb   : > { %p1458_p12 = pneg %p1457_p11 }
 0x4fc   : > { %p1464_p3 = por %p1463_p2, %p1462_p1 }
 0x4fe   : > { %p1465_p4 = pnand %p1464_p3, %p1458_p12 }
 0x500   : > { %1468 = shalt.err (!%p1465_p4)
}
 0x501   : > { %1333 = dma.vmem_to_hbm [thread:$0]  (%p1612_p5), %s1839_s14, 16, %s1837_s16, %s1002_s22  }
 0x502 PF: > { %p1343_p7 = scmp.ge.s32.totalorder %s1507_s20, 2  ;;  %s1039_s24 = sand.u32 1, %s1495_s17  }
 0x503   : > { %s1040_s21 = scalar_lea.sflag [#allocation3], %s1039_s24 }
 0x504   : > { %p1337_p8 = pnand %p1343_p7, %p1616_p6 }
 0x506   : > { %1486 = dma.done.wait (!%p1337_p8), %s1040_s21, 128  }
 0x507   : > { %1488 = vsyncadd (!%p1337_p8), %s1040_s21, 4294967168  ;;  %s1049_s29 = scalar_lea.sflag [#allocation5], %s1039_s24 }
 0x508   : > { %1490 = dma.done.wait (!%p1337_p8), %s1049_s29, 16  }
 0x509   : > { %1492 = vsyncadd (!%p1337_p8), %s1049_s29, 4294967280  ;;  %p25_p5 = scmp.ge.s32.totalorder %s1599_s23, 4   ;;  %s1898_s17 = smov %s1499_s18 }
 0x50a   : > { %s1899_s18 = smov %s1503_s19  ;;  %s1900_s19 = smov %s1610_s26 }
 0x50b   : > { %s1901_s20 = smov %s1599_s23  ;;  %27 = sbr.rel (!%p25_p5) target bundleno = 8 (0x8), region = 126 }
 0x512   :  { %1053 = vsyncpa [#allocation3], 1 }
 0x513   :  { %1055 = vsyncpa [#allocation3 + $0x1], 1 }
 0x514   :  { %1056 = vsyncpa [#allocation5], 1 }
 0x515   :  { %1058 = vsyncpa [#allocation5 + $0x1], 1 }

// kernel: my_block_forward.2
= control target key start
LH: loop header
LB: loop body
LE: loop exit
PB: predicated region body
PF: predicated region fallthrough
CT: control target
= control target key end

     0   :  { %s2556_s18 = smov 0   ;;  %s3404_s0 = inlined_call_operand.vmem [shape: bf16[2,8,256], index: 0, kind: input, shape index: {}]   ;;  %s3405_s1 = inlined_call_operand.vmem [shape: bf16[256,512], index: 1, kind: input, shape index: {}]   ;;  %s3406_s2 = inlined_call_operand.vmem [shape: bf16[128,512], index: 2, kind: input, shape index: {}]   ;;  %s3407_s3 = inlined_call_operand.vmem [shape: f32[1,512], index: 3, kind: input, shape index: {}]   ;;  %s3408_s4 = inlined_call_operand.vmem [shape: bf16[2,8,128], index: 4, kind: output, shape index: {0}]   ;;  %s3409_s5 = inlined_call_operand.vmem [shape: f32[2,1,128], index: 5, kind: output, shape index: {1}]  }
   0x1 LB: > { %s2067_s19 = sadd.s32 4294967295, %s2522_s18   ;;  %p2071_p0 = scmp.ge.s32.totalorder %s2522_s18, 1  ;;  %s2522_s18 = sphi %s2556_s18, %s16_s18  }
   0x2   : > { %p190_p1 = scmp.lt.s32.totalorder %s2522_s18, 3 }
   0x4   : > { %p191_p2 = pnand %p2071_p0, %p190_p1 }
   0x5   : > { %v2210_v0 = vld [vmem:[%s3405_s1 + $0x4] ss:$16 sps:$4 sm:$0xff] (!%p191_p2)   ;;  %v2212_v1 = vld [vmem:[%s3405_s1 + $0xc] ss:$16 sps:$4 sm:$0xff] (!%p191_p2)   ;;  %v2214_v2 = vld [vmem:[%s3405_s1] ss:$16 sps:$4 sm:$0xff] (!%p191_p2)  }
   0x6   : > { %194 = sbr.rel (%p191_p2) target bundleno = 2326 (0x916), region = 36  ;;  %679 = vmatprep.subr.bf16.mxu0 (!%p191_p2), %v2210_v0  ;;  %v2215_v3 = vld [vmem:[%s3405_s1 + $0x8] ss:$16 sps:$4 sm:$0xff] (!%p191_p2)   ;;  %720 = vmatprep.subr.bf16.mxu1 (!%p191_p2), %v2212_v1  ;;  %v2216_v4 = vld [vmem:[%s3405_s1 + $0x24] ss:$16 sps:$4 sm:$0xff] (!%p191_p2)   ;;  %p220_p3 = scmp.lt.s32.totalorder (!%p191_p2), %s2067_s19, 1 }
   0x7   : > { %680 = vmatpush1.bf16.msra.mxu0 (!%p191_p2), %v2214_v2  ;;  %721 = vmatpush1.bf16.msra.mxu1 (!%p191_p2), %v2215_v3  ;;  %v2218_v5 = vld [vmem:[%s3405_s1 + $0x2c] ss:$16 sps:$4 sm:$0xff] (!%p191_p2)   ;;  %v2220_v6 = vld [vmem:[%s3405_s1 + $0x20] ss:$16 sps:$4 sm:$0xff] (!%p191_p2)   ;;  %v2221_v7 = vld [vmem:[%s3405_s1 + $0x28] ss:$16 sps:$4 sm:$0xff] (!%p191_p2)  }
   0x8   : > { %681 = vmatprep.subr.bf16.mxu0 (!%p191_p2), %v2216_v4  ;;  %722 = vmatprep.subr.bf16.mxu1 (!%p191_p2), %v2218_v5  ;;  %v2222_v8 = vld [vmem:[%s3405_s1 + $0x44] ss:$16 sps:$4 sm:$0xff] (!%p191_p2)   ;;  %v2224_v9 = vld [vmem:[%s3405_s1 + $0x4c] ss:$16 sps:$4 sm:$0xff] (!%p191_p2)   ;;  %v2226_v10 = vld [vmem:[%s3405_s1 + $0x40] ss:$16 sps:$4 sm:$0xff] (!%p191_p2)  }
   0x9   : > { %v2227_v11 = vld [vmem:[%s3405_s1 + $0x48] ss:$16 sps:$4 sm:$0xff] (!%p191_p2)   ;;  %v2228_v12 = vld [vmem:[%s3405_s1 + $0x64] ss:$16 sps:$4 sm:$0xff] (!%p191_p2)   ;;  %v2230_v13 = vld [vmem:[%s3405_s1 + $0x6c] ss:$16 sps:$4 sm:$0xff] (!%p191_p2)  }
   0xa   : > { %v2232_v14 = vld [vmem:[%s3405_s1 + $0x60] ss:$16 sps:$4 sm:$0xff] (!%p191_p2)   ;;  %v2233_v15 = vld [vmem:[%s3405_s1 + $0x68] ss:$16 sps:$4 sm:$0xff] (!%p191_p2)   ;;  %v2234_v16 = vld [vmem:[%s3405_s1 + $0x84] ss:$16 sps:$4 sm:$0xff] (!%p191_p2)  }
   0xb   : > { %682 = vmatpush1.bf16.msra.mxu0 (!%p191_p2), %v2220_v6  ;;  %723 = vmatpush1.bf16.msra.mxu1 (!%p191_p2), %v2221_v7  ;;  %v2236_v17 = vld [vmem:[%s3405_s1 + $0x8c] ss:$16 sps:$4 sm:$0xff] (!%p191_p2)   ;;  %v2238_v18 = vld [vmem:[%s3405_s1 + $0x80] ss:$16 sps:$4 sm:$0xff] (!%p191_p2)   ;;  %v2239_v19 = vld [vmem:[%s3405_s1 + $0x88] ss:$16 sps:$4 sm:$0xff] (!%p191_p2)  }
   0xc   : > { %683 = vmatprep.subr.bf16.mxu0 (!%p191_p2), %v2222_v8  ;;  %724 = vmatprep.subr.bf16.mxu1 (!%p191_p2), %v2224_v9  ;;  %v2240_v20 = vld [vmem:[%s3405_s1 + $0xa4] ss:$16 sps:$4 sm:$0xff] (!%p191_p2)   ;;  %v2242_v21 = vld [vmem:[%s3405_s1 + $0xac] ss:$16 sps:$4 sm:$0xff] (!%p191_p2)   ;;  %v2244_v22 = vld [vmem:[%s3405_s1 + $0xa0] ss:$16 sps:$4 sm:$0xff] (!%p191_p2)  }
   0xd   : > { %v2245_v23 = vld [vmem:[%s3405_s1 + $0xa8] ss:$16 sps:$4 sm:$0xff]   ;;  %v2246_v24 = vld [vmem:[%s3405_s1 + $0xc4] ss:$16 sps:$4 sm:$0xff]   ;;  %v2248_v25 = vld [vmem:[%s3405_s1 + $0xcc] ss:$16 sps:$4 sm:$0xff]  }
   0xe   : > { %v2250_v26 = vld [vmem:[%s3405_s1 + $0xc0] ss:$16 sps:$4 sm:$0xff]   ;;  %v2251_v27 = vld [vmem:[%s3405_s1 + $0xc8] ss:$16 sps:$4 sm:$0xff]   ;;  %v2252_v28 = vld [vmem:[%s3405_s1 + $0xe4] ss:$16 sps:$4 sm:$0xff]  }
   0xf   : > { %684 = vmatpush1.bf16.msra.mxu0 %v2226_v10  ;;  %725 = vmatpush1.bf16.msra.mxu1 %v2227_v11  ;;  %v2254_v29 = vld [vmem:[%s3405_s1 + $0xec] ss:$16 sps:$4 sm:$0xff]   ;;  %v2256_v30 = vld [vmem:[%s3405_s1 + $0xe0] ss:$16 sps:$4 sm:$0xff]   ;;  %v2257_v31 = vld [vmem:[%s3405_s1 + $0xe8] ss:$16 sps:$4 sm:$0xff]  }
  0x10   : > { %685 = vmatprep.subr.bf16.mxu0 %v2228_v12  ;;  %726 = vmatprep.subr.bf16.mxu1 %v2230_v13  ;;  %v2258_v32 = vld [vmem:[%s3405_s1 + $0x104] ss:$16 sps:$4 sm:$0xff]   ;;  %v2260_v33 = vld [vmem:[%s3405_s1 + $0x10c] ss:$16 sps:$4 sm:$0xff]   ;;  %v2262_v34 = vld [vmem:[%s3405_s1 + $0x100] ss:$16 sps:$4 sm:$0xff]  }
  0x11   : > { %v2263_v35 = vld [vmem:[%s3405_s1 + $0x108] ss:$16 sps:$4 sm:$0xff]   ;;  %v2264_v36 = vld [vmem:[%s3405_s1 + $0x124] ss:$16 sps:$4 sm:$0xff]   ;;  %s3411_s19 = smov (!%p220_p3, %s2067_s19), 1  ;;  %v2524_v13 = vmov 0  }
  0x12   : > { %v2266_v37 = vld [vmem:[%s3405_s1 + $0x12c] ss:$16 sps:$4 sm:$0xff]   ;;  %v2268_v38 = vld [vmem:[%s3405_s1 + $0x120] ss:$16 sps:$4 sm:$0xff]   ;;  %v2269_v39 = vld [vmem:[%s3405_s1 + $0x128] ss:$16 sps:$4 sm:$0xff]   ;;  %s231_s11 = scalar_lea.vmem %s3409_s5, %s3411_s19 }
  0x13   : > { %686 = vmatpush1.bf16.msra.mxu0 %v2232_v14  ;;  %727 = vmatpush1.bf16.msra.mxu1 %v2233_v15  ;;  %v2270_v40 = vld [vmem:[%s3405_s1 + $0x144] ss:$16 sps:$4 sm:$0xff]   ;;  %s2199_s8 = sshll.u32 %s3411_s19, 3  ;;  %v2272_v41 = vld [vmem:[%s3405_s1 + $0x14c] ss:$16 sps:$4 sm:$0xff]   ;;  %vm1936_vm0 = vcmask 1040384  }
  0x14   : > { %687 = vmatprep.subr.bf16.mxu0 %v2234_v16  ;;  %728 = vmatprep.subr.bf16.mxu1 %v2236_v17  ;;  %v2274_v42 = vld [vmem:[%s3405_s1 + $0x140] ss:$16 sps:$4 sm:$0xff]   ;;  %v2275_v43 = vld [vmem:[%s3405_s1 + $0x148] ss:$16 sps:$4 sm:$0xff]   ;;  %s224_s17 = scalar_lea.vmem %s3404_s0, %s2199_s8  ;;  %v2276_v44 = vld [vmem:[%s3405_s1 + $0x164] ss:$16 sps:$4 sm:$0xff]  }
  0x15   : > { %v2278_v45 = vld [vmem:[%s3405_s1 + $0x16c] ss:$16 sps:$4 sm:$0xff]   ;;  %v265_v46 = vld [vmem:[%s224_s17] sm:$0xff]  ;;  %v2281_v49 = vld [vmem:[%s3405_s1 + $0x168] ss:$16 sps:$4 sm:$0xff]   ;;  %vm1938_vm1 = vcmask 1041408  }
  0x16   : > { %v2280_v47 = vld [vmem:[%s3405_s1 + $0x160] ss:$16 sps:$4 sm:$0xff]   ;;  %v2076_v48 = vcombine.high %v265_v46, %v265_v46  ;;  %v2282_v50 = vld [vmem:[%s3405_s1 + $0x184] ss:$16 sps:$4 sm:$0xff]   ;;  %v2284_v51 = vld [vmem:[%s3405_s1 + $0x18c] ss:$16 sps:$4 sm:$0xff]   ;;  %v2075_v4 = vcombine.low %v265_v46, %v265_v46 }
  0x17   : > { %688 = vmatpush1.bf16.msra.mxu0 %v2238_v18  ;;  %729 = vmatpush1.bf16.msra.mxu1 %v2239_v19  ;;  %v2286_v52 = vld [vmem:[%s3405_s1 + $0x180] ss:$16 sps:$4 sm:$0xff]   ;;  %v2287_v53 = vld [vmem:[%s3405_s1 + $0x188] ss:$16 sps:$4 sm:$0xff]   ;;  %v2288_v54 = vld [vmem:[%s3405_s1 + $0x1a4] ss:$16 sps:$4 sm:$0xff]  }
  0x18   : > { %689 = vmatprep.subr.bf16.mxu0 %v2240_v20  ;;  %730 = vmatprep.subr.bf16.mxu1 %v2242_v21  ;;  %v2290_v55 = vld [vmem:[%s3405_s1 + $0x1ac] ss:$16 sps:$4 sm:$0xff]   ;;  %v2292_v56 = vld [vmem:[%s3405_s1 + $0x1a0] ss:$16 sps:$4 sm:$0xff]   ;;  %v2293_v57 = vld [vmem:[%s3405_s1 + $0x1a8] ss:$16 sps:$4 sm:$0xff]  }
  0x19   : > { %711 = vmatprep.mubr.bf16.mxu0 %v2076_v48  ;;  %752 = vmatprep.mubr.bf16.mxu1 %v2076_v48  ;;  %v2294_v58 = vld [vmem:[%s3405_s1 + $0x1c4] ss:$16 sps:$4 sm:$0xff]   ;;  %v2296_v59 = vld [vmem:[%s3405_s1 + $0x1cc] ss:$16 sps:$4 sm:$0xff]   ;;  %v2298_v60 = vld [vmem:[%s3405_s1 + $0x1c0] ss:$16 sps:$4 sm:$0xff]  }
  0x1a   : > { %v2299_v61 = vld [vmem:[%s3405_s1 + $0x1c8] ss:$16 sps:$4 sm:$0xff]   ;;  %v2300_v62 = vld [vmem:[%s3405_s1 + $0x1e4] ss:$16 sps:$4 sm:$0xff]   ;;  %v2302_v63 = vld [vmem:[%s3405_s1 + $0x1ec] ss:$16 sps:$4 sm:$0xff]  }
  0x1b   : > { %690 = vmatpush1.bf16.msra.mxu0 %v2244_v22  ;;  %731 = vmatpush1.bf16.msra.mxu1 %v2245_v23  ;;  %v2304_v0 = vld [vmem:[%s3405_s1 + $0x1e0] ss:$16 sps:$4 sm:$0xff]   ;;  %v2305_v1 = vld [vmem:[%s3405_s1 + $0x1e8] ss:$16 sps:$4 sm:$0xff]   ;;  %v2769_v2 = vld [vmem:[%s3406_s2 + $0x4] ss:$16 sps:$4 sm:$0xff]  }
  0x1c   : > { %691 = vmatprep.subr.bf16.mxu0 %v2246_v24  ;;  %732 = vmatprep.subr.bf16.mxu1 %v2248_v25  ;;  %v2774_v3 = vld [vmem:[%s3406_s2 + $0xc] ss:$16 sps:$4 sm:$0xff]   ;;  %v2779_v5 = vld [vmem:[%s3406_s2] ss:$16 sps:$4 sm:$0xff]   ;;  %v2784_v6 = vld [vmem:[%s3406_s2 + $0x8] ss:$16 sps:$4 sm:$0xff]  }
  0x1d   : > { %v2791_v7 = vld [vmem:[%s3406_s2 + $0x24] ss:$16 sps:$4 sm:$0xff]   ;;  %v2796_v8 = vld [vmem:[%s3406_s2 + $0x2c] ss:$16 sps:$4 sm:$0xff]   ;;  %v2803_v9 = vld [vmem:[%s3406_s2 + $0x20] ss:$16 sps:$4 sm:$0xff]  }
  0x1e   : > { %v2808_v10 = vld [vmem:[%s3406_s2 + $0x28] ss:$16 sps:$4 sm:$0xff]   ;;  %v2815_v11 = vld [vmem:[%s3406_s2 + $0x44] ss:$16 sps:$4 sm:$0xff]   ;;  %v2820_v12 = vld [vmem:[%s3406_s2 + $0x4c] ss:$16 sps:$4 sm:$0xff]  }
  0x1f   : > { %692 = vmatpush1.bf16.msra.mxu0 %v2250_v26  ;;  %733 = vmatpush1.bf16.msra.mxu1 %v2251_v27  ;;  %v2829_v14 = vld [vmem:[%s3406_s2 + $0x40] ss:$16 sps:$4 sm:$0xff]   ;;  %v2834_v15 = vld [vmem:[%s3406_s2 + $0x48] ss:$16 sps:$4 sm:$0xff]   ;;  %v2841_v16 = vld [vmem:[%s3406_s2 + $0x64] ss:$16 sps:$4 sm:$0xff]  }
  0x20   : > { %693 = vmatprep.subr.bf16.mxu0 %v2252_v28  ;;  %734 = vmatprep.subr.bf16.mxu1 %v2254_v29  ;;  %v2846_v17 = vld [vmem:[%s3406_s2 + $0x6c] ss:$16 sps:$4 sm:$0xff]   ;;  %v2853_v18 = vld [vmem:[%s3406_s2 + $0x60] ss:$16 sps:$4 sm:$0xff]   ;;  %v2858_v19 = vld [vmem:[%s3406_s2 + $0x68] ss:$16 sps:$4 sm:$0xff]  }
  0x21   : > { %v2865_v20 = vld [vmem:[%s3406_s2 + $0x84] ss:$16 sps:$4 sm:$0xff]   ;;  %v2870_v21 = vld [vmem:[%s3406_s2 + $0x8c] ss:$16 sps:$4 sm:$0xff]   ;;  %v2877_v22 = vld [vmem:[%s3406_s2 + $0x80] ss:$16 sps:$4 sm:$0xff]  }
  0x22   : > { %v2882_v23 = vld [vmem:[%s3406_s2 + $0x88] ss:$16 sps:$4 sm:$0xff]   ;;  %v2889_v24 = vld [vmem:[%s3406_s2 + $0xa4] ss:$16 sps:$4 sm:$0xff]   ;;  %v2894_v25 = vld [vmem:[%s3406_s2 + $0xac] ss:$16 sps:$4 sm:$0xff]  }
  0x23   : > { %694 = vmatpush1.bf16.msra.mxu0 %v2256_v30  ;;  %735 = vmatpush1.bf16.msra.mxu1 %v2257_v31  ;;  %v2901_v26 = vld [vmem:[%s3406_s2 + $0xa0] ss:$16 sps:$4 sm:$0xff]   ;;  %v2906_v27 = vld [vmem:[%s3406_s2 + $0xa8] ss:$16 sps:$4 sm:$0xff]   ;;  %v2913_v28 = vld [vmem:[%s3406_s2 + $0xc4] ss:$16 sps:$4 sm:$0xff]  }
  0x24   : > { %695 = vmatprep.subr.bf16.mxu0 %v2258_v32  ;;  %736 = vmatprep.subr.bf16.mxu1 %v2260_v33  ;;  %v2918_v29 = vld [vmem:[%s3406_s2 + $0xcc] ss:$16 sps:$4 sm:$0xff]   ;;  %v2925_v30 = vld [vmem:[%s3406_s2 + $0xc0] ss:$16 sps:$4 sm:$0xff]   ;;  %v2930_v31 = vld [vmem:[%s3406_s2 + $0xc8] ss:$16 sps:$4 sm:$0xff]  }
  0x25   : > { %v2937_v32 = vld [vmem:[%s3406_s2 + $0xe4] ss:$16 sps:$4 sm:$0xff]   ;;  %v2942_v33 = vld [vmem:[%s3406_s2 + $0xec] ss:$16 sps:$4 sm:$0xff]   ;;  %vm1940_vm2 = vcmask 1042432   ;;  %vm1942_vm3 = vcmask 1043456  }
  0x26   : > { %vm1944_vm4 = vcmask 1044480   ;;  %vm1946_vm5 = vcmask 1045504   ;;  %vm1948_vm6 = vcmask 1046528   ;;  %s2525_s29 = smov 64   ;;  %s2074_s30 = sshll.u32 %s3411_s19, 2  ;;  %vm1981_vm7 = vcmask 523264  }
  0x27   : > { %696 = vmatpush1.bf16.msra.mxu0 %v2262_v34  ;;  %737 = vmatpush1.bf16.msra.mxu1 %v2263_v35  ;;  %v2949_v34 = vld [vmem:[%s3406_s2 + $0xe0] ss:$16 sps:$4 sm:$0xff]   ;;  %v2954_v35 = vld [vmem:[%s3406_s2 + $0xe8] ss:$16 sps:$4 sm:$0xff]   ;;  %s228_s8 = scalar_lea.vmem %s3408_s4, %s2074_s30 }
  0x28   : > { %697 = vmatprep.subr.bf16.mxu0 %v2264_v36  ;;  %738 = vmatprep.subr.bf16.mxu1 %v2266_v37 }
  0x2b   : > { %698 = vmatpush1.bf16.msra.mxu0 %v2268_v38  ;;  %739 = vmatpush1.bf16.msra.mxu1 %v2269_v39 }
  0x2c   : > { %699 = vmatprep.subr.bf16.mxu0 %v2270_v40  ;;  %740 = vmatprep.subr.bf16.mxu1 %v2272_v41 }
  0x2f   : > { %700 = vmatpush1.bf16.msra.mxu0 %v2274_v42  ;;  %741 = vmatpush1.bf16.msra.mxu1 %v2275_v43 }
  0x30   : > { %701 = vmatprep.subr.bf16.mxu0 %v2276_v44  ;;  %742 = vmatprep.subr.bf16.mxu1 %v2278_v45  ;;  %v332_v44 = vlaneseq }
  0x32   : > { %v333_v45 = vshrl.u32 %v332_v44, 7 }
  0x33   : > { %702 = vmatpush1.bf16.msra.mxu0 %v2280_v47  ;;  %743 = vmatpush1.bf16.msra.mxu1 %v2281_v49  ;;  %v330_v47 = vld [vmem:[%s3407_s3] sm:$0xf] }
  0x34   : > { %703 = vmatprep.subr.bf16.mxu0 %v2282_v50  ;;  %744 = vmatprep.subr.bf16.mxu1 %v2284_v51  ;;  %v334_v46 = vsub.s32 0, %v333_v45  ;;  %v338_v48 = vsub.s32 1, %v333_v45  ;;  %v346_v51 = vsub.s32 3, %v333_v45 }
  0x36   : > { %v335_v49 = vrot.slane %v330_v47, %v334_v46  ;;  %v339_v50 = vrot.slane %v330_v47, %v338_v48 }
  0x37   : > { %704 = vmatpush1.bf16.msra.mxu0 %v2286_v52  ;;  %745 = vmatpush1.bf16.msra.mxu1 %v2287_v53 }
  0x38   : > { %705 = vmatprep.subr.bf16.mxu0 %v2288_v54  ;;  %746 = vmatprep.subr.bf16.mxu1 %v2290_v55 }
  0x3b   : > { %706 = vmatpush1.bf16.msra.mxu0 %v2292_v56  ;;  %747 = vmatpush1.bf16.msra.mxu1 %v2293_v57 }
  0x3c   : > { %707 = vmatprep.subr.bf16.mxu0 %v2294_v58  ;;  %748 = vmatprep.subr.bf16.mxu1 %v2296_v59  ;;  %v347_v59 = vrot.slane %v330_v47, %v346_v51 }
  0x3f   : > { %708 = vmatpush1.bf16.msra.mxu0 %v2298_v60  ;;  %749 = vmatpush1.bf16.msra.mxu1 %v2299_v61 }
  0x40   : > { %709 = vmatprep.subr.bf16.mxu0 %v2300_v62  ;;  %750 = vmatprep.subr.bf16.mxu1 %v2302_v63  ;;  %v342_v63 = vsub.s32 2, %v333_v45 }
  0x43   : > { %710 = vmatpush1.bf16.msra.mxu0 %v2304_v0  ;;  %751 = vmatpush1.bf16.msra.mxu1 %v2305_v1 }
  0x44   : > { %921 = vmatprep.subr.bf16.mxu0 %v2769_v2  ;;  %962 = vmatprep.subr.bf16.mxu1 %v2774_v3 }
  0x46   : > { %712 = vmatmul.mubr.bf16.vlgmr.msra.gmra.mrb[0].mxu0 %v2075_v4  ;;  %753 = vmatmul.mubr.bf16.vlgmr.msra.gmra.mrb[0].mxu1 %v2075_v4 }
  0x47   : > { %922 = vmatpush1.bf16.msra.mxu0 %v2779_v5  ;;  %963 = vmatpush1.bf16.msra.mxu1 %v2784_v6 }
  0x48   : > { %923 = vmatprep.subr.bf16.mxu0 %v2791_v7  ;;  %964 = vmatprep.subr.bf16.mxu1 %v2796_v8 }
  0x49   : > { %953 = vmatprep.mubr.bf16.mxu0 %v2524_v13  ;;  %994 = vmatprep.mubr.bf16.mxu1 %v2524_v13 }
  0x4b   : > { %924 = vmatpush1.bf16.msra.mxu0 %v2803_v9  ;;  %965 = vmatpush1.bf16.msra.mxu1 %v2808_v10 }
  0x4c   : > { %925 = vmatprep.subr.bf16.mxu0 %v2815_v11  ;;  %966 = vmatprep.subr.bf16.mxu1 %v2820_v12 }
  0x4f   : > { %926 = vmatpush1.bf16.msra.mxu0 %v2829_v14  ;;  %967 = vmatpush1.bf16.msra.mxu1 %v2834_v15 }
  0x50   : > { %927 = vmatprep.subr.bf16.mxu0 %v2841_v16  ;;  %968 = vmatprep.subr.bf16.mxu1 %v2846_v17 }
  0x53   : > { %928 = vmatpush1.bf16.msra.mxu0 %v2853_v18  ;;  %969 = vmatpush1.bf16.msra.mxu1 %v2858_v19 }
  0x54   : > { %929 = vmatprep.subr.bf16.mxu0 %v2865_v20  ;;  %970 = vmatprep.subr.bf16.mxu1 %v2870_v21 }
  0x57   : > { %930 = vmatpush1.bf16.msra.mxu0 %v2877_v22  ;;  %971 = vmatpush1.bf16.msra.mxu1 %v2882_v23 }
  0x58   : > { %931 = vmatprep.subr.bf16.mxu0 %v2889_v24  ;;  %972 = vmatprep.subr.bf16.mxu1 %v2894_v25 }
  0x5b   : > { %932 = vmatpush1.bf16.msra.mxu0 %v2901_v26  ;;  %973 = vmatpush1.bf16.msra.mxu1 %v2906_v27 }
  0x5c   : > { %933 = vmatprep.subr.bf16.mxu0 %v2913_v28  ;;  %974 = vmatprep.subr.bf16.mxu1 %v2918_v29 }
  0x5f   : > { %934 = vmatpush1.bf16.msra.mxu0 %v2925_v30  ;;  %975 = vmatpush1.bf16.msra.mxu1 %v2930_v31 }
  0x60   : > { %935 = vmatprep.subr.bf16.mxu0 %v2937_v32  ;;  %976 = vmatprep.subr.bf16.mxu1 %v2942_v33 }
  0x63   : > { %936 = vmatpush1.bf16.msra.mxu0 %v2949_v34  ;;  %977 = vmatpush1.bf16.msra.mxu1 %v2954_v35 }
  0x64   : > { %1032 = vmatprep.subr.bf16.mxu0 %v2769_v2  ;;  %1073 = vmatprep.subr.bf16.mxu1 %v2774_v3 }
  0x66   : > { %954 = vmatmul.mubr.bf16.vlgmr.msra.gmra.mrb[4].mxu0 %v2524_v13  ;;  %995 = vmatmul.mubr.bf16.vlgmr.msra.gmra.mrb[4].mxu1 %v2524_v13 }
  0x67   : > { %1033 = vmatpush1.bf16.msra.mxu0 %v2779_v5  ;;  %1074 = vmatpush1.bf16.msra.mxu1 %v2784_v6 }
  0x68   : > { %1034 = vmatprep.subr.bf16.mxu0 %v2791_v7  ;;  %1075 = vmatprep.subr.bf16.mxu1 %v2796_v8 }
  0x69   : > { %1064 = vmatprep.mubr.bf16.mxu0 %v2524_v13  ;;  %1105 = vmatprep.mubr.bf16.mxu1 %v2524_v13 }
  0x6b   : > { %1035 = vmatpush1.bf16.msra.mxu0 %v2803_v9  ;;  %1076 = vmatpush1.bf16.msra.mxu1 %v2808_v10 }
  0x6c   : > { %1036 = vmatprep.subr.bf16.mxu0 %v2815_v11  ;;  %1077 = vmatprep.subr.bf16.mxu1 %v2820_v12 }
  0x6f   : > { %1037 = vmatpush1.bf16.msra.mxu0 %v2829_v14  ;;  %1078 = vmatpush1.bf16.msra.mxu1 %v2834_v15 }
  0x70   : > { %1038 = vmatprep.subr.bf16.mxu0 %v2841_v16  ;;  %1079 = vmatprep.subr.bf16.mxu1 %v2846_v17 }
  0x73   : > { %1039 = vmatpush1.bf16.msra.mxu0 %v2853_v18  ;;  %1080 = vmatpush1.bf16.msra.mxu1 %v2858_v19 }
  0x74   : > { %1040 = vmatprep.subr.bf16.mxu0 %v2865_v20  ;;  %1081 = vmatprep.subr.bf16.mxu1 %v2870_v21 }
  0x77   : > { %1041 = vmatpush1.bf16.msra.mxu0 %v2877_v22  ;;  %1082 = vmatpush1.bf16.msra.mxu1 %v2882_v23 }
  0x78   : > { %1042 = vmatprep.subr.bf16.mxu0 %v2889_v24  ;;  %1083 = vmatprep.subr.bf16.mxu1 %v2894_v25 }
  0x7b   : > { %1043 = vmatpush1.bf16.msra.mxu0 %v2901_v26  ;;  %1084 = vmatpush1.bf16.msra.mxu1 %v2906_v27 }
  0x7c   : > { %1044 = vmatprep.subr.bf16.mxu0 %v2913_v28  ;;  %1085 = vmatprep.subr.bf16.mxu1 %v2918_v29 }
  0x7f   : > { %1045 = vmatpush1.bf16.msra.mxu0 %v2925_v30  ;;  %1086 = vmatpush1.bf16.msra.mxu1 %v2930_v31 }
  0x80   : > { %1046 = vmatprep.subr.bf16.mxu0 %v2937_v32  ;;  %1087 = vmatprep.subr.bf16.mxu1 %v2942_v33 }
  0x83   : > { %1047 = vmatpush1.bf16.msra.mxu0 %v2949_v34  ;;  %1088 = vmatpush1.bf16.msra.mxu1 %v2954_v35 }
  0x84   : > { %1162 = vmatprep.subr.bf16.mxu0 %v2769_v2  ;;  %1203 = vmatprep.subr.bf16.mxu1 %v2774_v3 }
 0x119   : > { %v713_v36 = vpop.f32.mrb[0].mxu0  ;;  %v754_v37 = vpop.f32.mrb[0].mxu1 }
 0x11a   : > { %v715_v38 = vpop.f32.mrb[1].mxu0  ;;  %v756_v39 = vpop.f32.mrb[1].mxu1  ;;  %v3001_v52 = vadd.f32 %v713_v36, %v335_v49 }
 0x11b   : > { %v717_v40 = vpop.f32.mrb[2].mxu0  ;;  %v758_v41 = vpop.f32.mrb[2].mxu1  ;;  %v3003_v53 = vadd.f32 %v715_v38, %v339_v50  ;;  %v3007_v36 = vadd.f32 %v756_v39, %v347_v59  ;;  %v343_v38 = vrot.slane %v330_v47, %v342_v63 }
 0x11c   : > { %v718_v42 = vpop.f32.mrb[3].mxu0  ;;  %v759_v43 = vpop.f32.mrb[3].mxu1 }
 0x11d   : > { %v3010_v42 = vadd.f32 %v754_v37, %v343_v38 }
 0x139   : > { %v955_v54 = vpop.f32.mrb[4].mxu0  ;;  %v996_v55 = vpop.f32.mrb[4].mxu1 }
 0x13a   : > { %v1003_v56 = vadd.f32 %v955_v54, %v3001_v52  ;;  %v957_v57 = vpop.f32.mrb[5].mxu0  ;;  %v998_v58 = vpop.f32.mrb[5].mxu1  ;;  %v1005_v44 = vadd.f32 %v996_v55, %v3010_v42 }
 0x13b   : > { %v1004_v60 = vadd.f32 %v957_v57, %v3003_v53  ;;  %v959_v61 = vpop.f32.mrb[6].mxu0  ;;  %v1000_v62 = vpop.f32.mrb[6].mxu1  ;;  %v1006_v41 = vadd.f32 %v998_v58, %v3007_v36 }
 0x13c   : > { %v2173_v0 = vmul.f32 -1.442695, %v1003_v56  ;;  %v960_v1 = vpop.f32.mrb[7].mxu0  ;;  %v1001_v4 = vpop.f32.mrb[7].mxu1 }
 0x13d   : > { %v2174_v40 = vmul.f32 -1.442695, %v1004_v60  ;;  %v2175_v43 = vmul.f32 -1.442695, %v1006_v41 }
 0x13e   : > { %2356 = vpow2.f32 %v2173_v0 }
 0x13f   : > { %2358 = vpow2.f32 %v2174_v40 }
 0x140   : > { %2360 = vpow2.f32 %v2175_v43 }
 0x141   : > { %2362 = vtanh.f32 %v1005_v44 }
 0x148   : > { %v2357_v46 = vpop.eup %2356 }
 0x149   : > { %v2359_v48 = vpop.eup %2358  ;;  %v1010_v49 = vadd.f32 1.0, %v2357_v46 }
 0x14a   : > { %v1016_v45 = vadd.f32 1.0, %v2359_v48  ;;  %v2361_v50 = vpop.eup %2360 }
 0x14b   : > { %2364 = vrcp.f32 %v1010_v49  ;;  %v2363_v39 = vpop.eup %2362  ;;  %v1023_v56 = vadd.f32 1.0, %v2361_v50 }
 0x14c   : > { %2366 = vrcp.f32 %v1016_v45 }
 0x14d   : > { %2368 = vrcp.f32 %v1023_v56 }
 0x155   : > { %v2365_v51 = vpop.eup %2364 }
 0x156   : > { %v2367_v54 = vpop.eup %2366  ;;  %v1027_v47 = vmul.f32 %v2365_v51, %v2363_v39 }
 0x157   : > { %v1026_v57 = vmul.f32 0.0, %v2367_v54  ;;  %v2369_v55 = vpop.eup %2368 }
 0x159   : > { %v3013_v37 = vadd.f32 %v1027_v47, %v1026_v57 }
 0x15b   : > { %2370 = vtanh.f32 %v3013_v37 }
 0x165   : > { %v2371_v58 = vpop.eup %2370 }
 0x166   : > { %v3016_v59 = vmul.f32 %v2371_v58, %v2369_v55 }
 0x168   : > { %v1031_v60 = vpack.c.bf16 %v3016_v59, %v3016_v59 }
 0x16a   : > { %1065 = vmatmul.mubr.bf16.vlgmr.msra.gmra.mrb[8].mxu0 %v1031_v60  ;;  %1106 = vmatmul.mubr.bf16.vlgmr.msra.gmra.mrb[8].mxu1 %v1031_v60 }
 0x16b   : > { %1163 = vmatpush1.bf16.msra.mxu0 %v2779_v5  ;;  %1204 = vmatpush1.bf16.msra.mxu1 %v2784_v6 }
 0x16c   : > { %1164 = vmatprep.subr.bf16.mxu0 %v2791_v7  ;;  %1205 = vmatprep.subr.bf16.mxu1 %v2796_v8 }
 0x16d   : > { %1194 = vmatprep.mubr.bf16.mxu0 %v2524_v13  ;;  %1235 = vmatprep.mubr.bf16.mxu1 %v2524_v13 }
 0x16f   : > { %1165 = vmatpush1.bf16.msra.mxu0 %v2803_v9  ;;  %1206 = vmatpush1.bf16.msra.mxu1 %v2808_v10 }
 0x170   : > { %1166 = vmatprep.subr.bf16.mxu0 %v2815_v11  ;;  %1207 = vmatprep.subr.bf16.mxu1 %v2820_v12 }
 0x173   : > { %1167 = vmatpush1.bf16.msra.mxu0 %v2829_v14  ;;  %1208 = vmatpush1.bf16.msra.mxu1 %v2834_v15 }
 0x174   : > { %1168 = vmatprep.subr.bf16.mxu0 %v2841_v16  ;;  %1209 = vmatprep.subr.bf16.mxu1 %v2846_v17 }
 0x177   : > { %1169 = vmatpush1.bf16.msra.mxu0 %v2853_v18  ;;  %1210 = vmatpush1.bf16.msra.mxu1 %v2858_v19 }
 0x178   : > { %1170 = vmatprep.subr.bf16.mxu0 %v2865_v20  ;;  %1211 = vmatprep.subr.bf16.mxu1 %v2870_v21 }
 0x17b   : > { %1171 = vmatpush1.bf16.msra.mxu0 %v2877_v22  ;;  %1212 = vmatpush1.bf16.msra.mxu1 %v2882_v23 }
 0x17c   : > { %1172 = vmatprep.subr.bf16.mxu0 %v2889_v24  ;;  %1213 = vmatprep.subr.bf16.mxu1 %v2894_v25 }
 0x17f   : > { %1173 = vmatpush1.bf16.msra.mxu0 %v2901_v26  ;;  %1214 = vmatpush1.bf16.msra.mxu1 %v2906_v27 }
 0x180   : > { %1174 = vmatprep.subr.bf16.mxu0 %v2913_v28  ;;  %1215 = vmatprep.subr.bf16.mxu1 %v2918_v29 }
 0x183   : > { %1175 = vmatpush1.bf16.msra.mxu0 %v2925_v30  ;;  %1216 = vmatpush1.bf16.msra.mxu1 %v2930_v31 }
 0x184   : > { %1176 = vmatprep.subr.bf16.mxu0 %v2937_v32  ;;  %1217 = vmatprep.subr.bf16.mxu1 %v2942_v33 }
 0x187   : > { %1177 = vmatpush1.bf16.msra.mxu0 %v2949_v34  ;;  %1218 = vmatpush1.bf16.msra.mxu1 %v2954_v35 }
 0x188   : > { %1291 = vmatprep.subr.bf16.mxu0 %v2769_v2  ;;  %1332 = vmatprep.subr.bf16.mxu1 %v2774_v3 }
 0x23d   : > { %v1066_v61 = vpop.f32.mrb[8].mxu0  ;;  %v1107_v62 = vpop.f32.mrb[8].mxu1 }
 0x23e   : > { %v1118_v63 = vrot.slane %v1066_v61, 7  ;;  %v1068_v0 = vpop.f32.mrb[9].mxu0  ;;  %v1109_v1 = vpop.f32.mrb[9].mxu1  ;;  %v1120_v39 = vrot.slane %v1107_v62, 7 }
 0x23f   : > { %v1119_v4 = vrot.slane %v1068_v0, 7  ;;  %v1070_v40 = vpop.f32.mrb[10].mxu0  ;;  %v1111_v38 = vpop.f32.mrb[10].mxu1  ;;  %v1121_v45 = vrot.slane %v1109_v1, 7 }
 0x240   : > { %v1126_v41 = vadd.f32 %v1118_v63, %v3001_v52  ;;  %v1071_v43 = vpop.f32.mrb[11].mxu0  ;;  %v1112_v44 = vpop.f32.mrb[11].mxu1  ;;  %v1128_v54 = vadd.f32 %v1120_v39, %v3010_v42  ;;  %v1150_v63 = vrot.slane %v3013_v37, 7 }
 0x241   : > { %v1127_v46 = vadd.f32 %v1119_v4, %v3003_v53  ;;  %v1129_v50 = vadd.f32 %v1121_v45, %v3007_v36 }
 0x242   : > { %v2176_v48 = vmul.f32 -1.442695, %v1126_v41 }
 0x243   : > { %v2177_v49 = vmul.f32 -1.442695, %v1127_v46  ;;  %v2178_v51 = vmul.f32 -1.442695, %v1129_v50 }
 0x244   : > { %2372 = vpow2.f32 %v2176_v48 }
 0x245   : > { %2374 = vpow2.f32 %v2177_v49 }
 0x246   : > { %2376 = vpow2.f32 %v2178_v51 }
 0x247   : > { %2378 = vtanh.f32 %v1128_v54 }
 0x24e   : > { %v2373_v47 = vpop.eup %2372 }
 0x24f   : > { %v2375_v56 = vpop.eup %2374  ;;  %v1133_v57 = vadd.f32 1.0, %v2373_v47 }
 0x250   : > { %v1139_v55 = vadd.f32 1.0, %v2375_v56  ;;  %v2377_v58 = vpop.eup %2376 }
 0x251   : > { %2380 = vrcp.f32 %v1133_v57  ;;  %v2379_v60 = vpop.eup %2378  ;;  %v1146_v4 = vadd.f32 1.0, %v2377_v58 }
 0x252   : > { %2382 = vrcp.f32 %v1139_v55 }
 0x253   : > { %2384 = vrcp.f32 %v1146_v4 }
 0x25b   : > { %v2381_v61 = vpop.eup %2380 }
 0x25c   : > { %v2383_v0 = vpop.eup %2382  ;;  %v1153_v1 = vmul.f32 %v2381_v61, %v2379_v60 }
 0x25d   : > { %v1152_v62 = vmul.f32 %v2383_v0, %v1150_v63  ;;  %v2385_v38 = vpop.eup %2384 }
 0x25f   : > { %v3059_v40 = vadd.f32 %v1153_v1, %v1152_v62 }
 0x261   : > { %2386 = vtanh.f32 %v3059_v40 }
 0x26b   : > { %v2387_v41 = vpop.eup %2386 }
 0x26c   : > { %v3062_v43 = vmul.f32 %v2387_v41, %v2385_v38 }
 0x26e   : > { %v1157_v44 = vpack.c.bf16 %v3062_v43, %v3062_v43 }
 0x270   : > { %v1159_v46 = vshrl.u32 %v1157_v44, 16 }
 0x272   : > { %1195 = vmatmul.mubr.bf16.vlgmr.msra.gmra.mrb[12].mxu0 %v1159_v46  ;;  %1236 = vmatmul.mubr.bf16.vlgmr.msra.gmra.mrb[12].mxu1 %v1159_v46 }
 0x273   : > { %1292 = vmatpush1.bf16.msra.mxu0 %v2779_v5  ;;  %1333 = vmatpush1.bf16.msra.mxu1 %v2784_v6 }
 0x274   : > { %1293 = vmatprep.subr.bf16.mxu0 %v2791_v7  ;;  %1334 = vmatprep.subr.bf16.mxu1 %v2796_v8 }
 0x275   : > { %1323 = vmatprep.mubr.bf16.mxu0 %v2524_v13  ;;  %1364 = vmatprep.mubr.bf16.mxu1 %v2524_v13 }
 0x277   : > { %1294 = vmatpush1.bf16.msra.mxu0 %v2803_v9  ;;  %1335 = vmatpush1.bf16.msra.mxu1 %v2808_v10 }
 0x278   : > { %1295 = vmatprep.subr.bf16.mxu0 %v2815_v11  ;;  %1336 = vmatprep.subr.bf16.mxu1 %v2820_v12 }
 0x27b   : > { %1296 = vmatpush1.bf16.msra.mxu0 %v2829_v14  ;;  %1337 = vmatpush1.bf16.msra.mxu1 %v2834_v15 }
 0x27c   : > { %1297 = vmatprep.subr.bf16.mxu0 %v2841_v16  ;;  %1338 = vmatprep.subr.bf16.mxu1 %v2846_v17 }
 0x27f   : > { %1298 = vmatpush1.bf16.msra.mxu0 %v2853_v18  ;;  %1339 = vmatpush1.bf16.msra.mxu1 %v2858_v19 }
 0x280   : > { %1299 = vmatprep.subr.bf16.mxu0 %v2865_v20  ;;  %1340 = vmatprep.subr.bf16.mxu1 %v2870_v21 }
 0x283   : > { %1300 = vmatpush1.bf16.msra.mxu0 %v2877_v22  ;;  %1341 = vmatpush1.bf16.msra.mxu1 %v2882_v23 }
 0x284   : > { %1301 = vmatprep.subr.bf16.mxu0 %v2889_v24  ;;  %1342 = vmatprep.subr.bf16.mxu1 %v2894_v25 }
 0x287   : > { %1302 = vmatpush1.bf16.msra.mxu0 %v2901_v26  ;;  %1343 = vmatpush1.bf16.msra.mxu1 %v2906_v27 }
 0x288   : > { %1303 = vmatprep.subr.bf16.mxu0 %v2913_v28  ;;  %1344 = vmatprep.subr.bf16.mxu1 %v2918_v29 }
 0x28b   : > { %1304 = vmatpush1.bf16.msra.mxu0 %v2925_v30  ;;  %1345 = vmatpush1.bf16.msra.mxu1 %v2930_v31 }
 0x28c   : > { %1305 = vmatprep.subr.bf16.mxu0 %v2937_v32  ;;  %1346 = vmatprep.subr.bf16.mxu1 %v2942_v33 }
 0x28f   : > { %1306 = vmatpush1.bf16.msra.mxu0 %v2949_v34  ;;  %1347 = vmatpush1.bf16.msra.mxu1 %v2954_v35 }
 0x290   : > { %1422 = vmatprep.subr.bf16.mxu0 %v2769_v2  ;;  %1463 = vmatprep.subr.bf16.mxu1 %v2774_v3 }
 0x345   : > { %v1196_v37 = vpop.f32.mrb[12].mxu0  ;;  %v1237_v48 = vpop.f32.mrb[12].mxu1 }
 0x346   : > { %v1248_v49 = vrot.slane %v1196_v37, 6  ;;  %v1198_v45 = vpop.f32.mrb[13].mxu0  ;;  %v1239_v50 = vpop.f32.mrb[13].mxu1  ;;  %v1250_v0 = vrot.slane %v1237_v48, 6 }
 0x347   : > { %v1249_v39 = vrot.slane %v1198_v45, 6  ;;  %v1200_v51 = vpop.f32.mrb[14].mxu0  ;;  %v1241_v54 = vpop.f32.mrb[14].mxu1  ;;  %v1251_v61 = vrot.slane %v1239_v50, 6  ;;  %v1280_v45 = vrot.slane %v3059_v40, 7 }
 0x348   : > { %v1256_v47 = vadd.f32 %v1248_v49, %v3001_v52  ;;  %v1201_v56 = vpop.f32.mrb[15].mxu0  ;;  %v1242_v57 = vpop.f32.mrb[15].mxu1  ;;  %v1258_v4 = vadd.f32 %v1250_v0, %v3010_v42 }
 0x349   : > { %v1257_v55 = vadd.f32 %v1249_v39, %v3003_v53  ;;  %v1259_v63 = vadd.f32 %v1251_v61, %v3007_v36 }
 0x34a   : > { %v2179_v58 = vmul.f32 -1.442695, %v1256_v47 }
 0x34b   : > { %v2180_v60 = vmul.f32 -1.442695, %v1257_v55  ;;  %v2181_v1 = vmul.f32 -1.442695, %v1259_v63  ;;  %v1937_v55 = vsel %vm1936_vm0, %v3016_v59, %v3062_v43 }
 0x34c   : > { %2388 = vpow2.f32 %v2179_v58 }
 0x34d   : > { %2390 = vpow2.f32 %v2180_v60 }
 0x34e   : > { %2392 = vpow2.f32 %v2181_v1 }
 0x34f   : > { %2394 = vtanh.f32 %v1258_v4 }
 0x356   : > { %v2389_v62 = vpop.eup %2388 }
 0x357   : > { %v2391_v38 = vpop.eup %2390  ;;  %v1263_v41 = vadd.f32 1.0, %v2389_v62 }
 0x358   : > { %v1269_v44 = vadd.f32 1.0, %v2391_v38  ;;  %v2393_v46 = vpop.eup %2392 }
 0x359   : > { %2396 = vrcp.f32 %v1263_v41  ;;  %v2395_v37 = vpop.eup %2394  ;;  %v1276_v51 = vadd.f32 1.0, %v2393_v46 }
 0x35a   : > { %2398 = vrcp.f32 %v1269_v44 }
 0x35b   : > { %2400 = vrcp.f32 %v1276_v51 }
 0x363   : > { %v2397_v49 = vpop.eup %2396 }
 0x364   : > { %v2399_v50 = vpop.eup %2398  ;;  %v1283_v39 = vmul.f32 %v2397_v49, %v2395_v37 }
 0x365   : > { %v1282_v48 = vmul.f32 %v2399_v50, %v1280_v45  ;;  %v2401_v47 = vpop.eup %2400 }
 0x367   : > { %v3105_v54 = vadd.f32 %v1283_v39, %v1282_v48 }
 0x369   : > { %2402 = vtanh.f32 %v3105_v54 }
 0x373   : > { %v2403_v56 = vpop.eup %2402 }
 0x374   : > { %v3108_v57 = vmul.f32 %v2403_v56, %v2401_v47 }
 0x376   : > { %v1287_v40 = vpack.c.bf16 %v3108_v57, %v3108_v57  ;;  %v3117_v58 = vsel %vm1938_vm1, %v1937_v55, %v3108_v57 }
 0x378   : > { %v1289_v60 = vrot.slane %v1287_v40, 1 }
 0x37a   : > { %1324 = vmatmul.mubr.bf16.vlgmr.msra.gmra.mrb[16].mxu0 %v1289_v60  ;;  %1365 = vmatmul.mubr.bf16.vlgmr.msra.gmra.mrb[16].mxu1 %v1289_v60 }
 0x37b   : > { %1423 = vmatpush1.bf16.msra.mxu0 %v2779_v5  ;;  %1464 = vmatpush1.bf16.msra.mxu1 %v2784_v6 }
 0x37c   : > { %1424 = vmatprep.subr.bf16.mxu0 %v2791_v7  ;;  %1465 = vmatprep.subr.bf16.mxu1 %v2796_v8 }
 0x37d   : > { %1454 = vmatprep.mubr.bf16.mxu0 %v2524_v13  ;;  %1495 = vmatprep.mubr.bf16.mxu1 %v2524_v13 }
 0x37f   : > { %1425 = vmatpush1.bf16.msra.mxu0 %v2803_v9  ;;  %1466 = vmatpush1.bf16.msra.mxu1 %v2808_v10 }
 0x380   : > { %1426 = vmatprep.subr.bf16.mxu0 %v2815_v11  ;;  %1467 = vmatprep.subr.bf16.mxu1 %v2820_v12 }
 0x383   : > { %1427 = vmatpush1.bf16.msra.mxu0 %v2829_v14  ;;  %1468 = vmatpush1.bf16.msra.mxu1 %v2834_v15 }
 0x384   : > { %1428 = vmatprep.subr.bf16.mxu0 %v2841_v16  ;;  %1469 = vmatprep.subr.bf16.mxu1 %v2846_v17 }
 0x387   : > { %1429 = vmatpush1.bf16.msra.mxu0 %v2853_v18  ;;  %1470 = vmatpush1.bf16.msra.mxu1 %v2858_v19 }
 0x388   : > { %1430 = vmatprep.subr.bf16.mxu0 %v2865_v20  ;;  %1471 = vmatprep.subr.bf16.mxu1 %v2870_v21 }
 0x38b   : > { %1431 = vmatpush1.bf16.msra.mxu0 %v2877_v22  ;;  %1472 = vmatpush1.bf16.msra.mxu1 %v2882_v23 }
 0x38c   : > { %1432 = vmatprep.subr.bf16.mxu0 %v2889_v24  ;;  %1473 = vmatprep.subr.bf16.mxu1 %v2894_v25 }
 0x38f   : > { %1433 = vmatpush1.bf16.msra.mxu0 %v2901_v26  ;;  %1474 = vmatpush1.bf16.msra.mxu1 %v2906_v27 }
 0x390   : > { %1434 = vmatprep.subr.bf16.mxu0 %v2913_v28  ;;  %1475 = vmatprep.subr.bf16.mxu1 %v2918_v29 }
 0x393   : > { %1435 = vmatpush1.bf16.msra.mxu0 %v2925_v30  ;;  %1476 = vmatpush1.bf16.msra.mxu1 %v2930_v31 }
 0x394   : > { %1436 = vmatprep.subr.bf16.mxu0 %v2937_v32  ;;  %1477 = vmatprep.subr.bf16.mxu1 %v2942_v33 }
 0x397   : > { %1437 = vmatpush1.bf16.msra.mxu0 %v2949_v34  ;;  %1478 = vmatpush1.bf16.msra.mxu1 %v2954_v35 }
 0x398   : > { %1551 = vmatprep.subr.bf16.mxu0 %v2769_v2  ;;  %1592 = vmatprep.subr.bf16.mxu1 %v2774_v3 }
 0x44d   : > { %v1325_v61 = vpop.f32.mrb[16].mxu0  ;;  %v1366_v63 = vpop.f32.mrb[16].mxu1 }
 0x44e   : > { %v1377_v0 = vrot.slane %v1325_v61, 5  ;;  %v1327_v1 = vpop.f32.mrb[17].mxu0  ;;  %v1368_v4 = vpop.f32.mrb[17].mxu1  ;;  %v1379_v48 = vrot.slane %v1366_v63, 5 }
 0x44f   : > { %v1378_v62 = vrot.slane %v1327_v1, 5  ;;  %v1329_v38 = vpop.f32.mrb[18].mxu0  ;;  %v1370_v41 = vpop.f32.mrb[18].mxu1  ;;  %v1380_v39 = vrot.slane %v1368_v4, 5  ;;  %v1409_v4 = vrot.slane %v3105_v54, 7 }
 0x450   : > { %v1385_v44 = vadd.f32 %v1377_v0, %v3001_v52  ;;  %v1330_v46 = vpop.f32.mrb[19].mxu0  ;;  %v1371_v37 = vpop.f32.mrb[19].mxu1  ;;  %v1387_v56 = vadd.f32 %v1379_v48, %v3010_v42 }
 0x451   : > { %v1386_v49 = vadd.f32 %v1378_v62, %v3003_v53  ;;  %v1388_v51 = vadd.f32 %v1380_v39, %v3007_v36 }
 0x452   : > { %v2182_v45 = vmul.f32 -1.442695, %v1385_v44 }
 0x453   : > { %v2183_v50 = vmul.f32 -1.442695, %v1386_v49  ;;  %v2184_v47 = vmul.f32 -1.442695, %v1388_v51 }
 0x454   : > { %2404 = vpow2.f32 %v2182_v45 }
 0x455   : > { %2406 = vpow2.f32 %v2183_v50 }
 0x456   : > { %2408 = vpow2.f32 %v2184_v47 }
 0x457   : > { %2410 = vtanh.f32 %v1387_v56 }
 0x45e   : > { %v2405_v55 = vpop.eup %2404 }
 0x45f   : > { %v2407_v40 = vpop.eup %2406  ;;  %v1392_v60 = vadd.f32 1.0, %v2405_v55 }
 0x460   : > { %v1398_v61 = vadd.f32 1.0, %v2407_v40  ;;  %v2409_v0 = vpop.eup %2408 }
 0x461   : > { %2412 = vrcp.f32 %v1392_v60  ;;  %v2411_v1 = vpop.eup %2410  ;;  %v1405_v44 = vadd.f32 1.0, %v2409_v0 }
 0x462   : > { %2414 = vrcp.f32 %v1398_v61 }
 0x463   : > { %2416 = vrcp.f32 %v1405_v44 }
 0x46b   : > { %v2413_v62 = vpop.eup %2412 }
 0x46c   : > { %v2415_v38 = vpop.eup %2414  ;;  %v1412_v41 = vmul.f32 %v2413_v62, %v2411_v1 }
 0x46d   : > { %v1411_v63 = vmul.f32 %v2415_v38, %v1409_v4  ;;  %v2417_v37 = vpop.eup %2416 }
 0x46f   : > { %v3158_v46 = vadd.f32 %v1412_v41, %v1411_v63 }
 0x471   : > { %2418 = vtanh.f32 %v3158_v46 }
 0x47b   : > { %v2419_v49 = vpop.eup %2418 }
 0x47c   : > { %v3161_v45 = vmul.f32 %v2419_v49, %v2417_v37 }
 0x47e   : > { %v1416_v50 = vpack.c.bf16 %v3161_v45, %v3161_v45  ;;  %v3168_v54 = vsel %vm1940_vm2, %v3117_v58, %v3161_v45 }
 0x480   : > { %v1418_v39 = vshrl.u32 %v1416_v50, 16 }
 0x482   : > { %v1420_v51 = vrot.slane %v1418_v39, 1 }
 0x484   : > { %1455 = vmatmul.mubr.bf16.vlgmr.msra.gmra.mrb[20].mxu0 %v1420_v51  ;;  %1496 = vmatmul.mubr.bf16.vlgmr.msra.gmra.mrb[20].mxu1 %v1420_v51 }
 0x485   : > { %1552 = vmatpush1.bf16.msra.mxu0 %v2779_v5  ;;  %1593 = vmatpush1.bf16.msra.mxu1 %v2784_v6 }
 0x486   : > { %1553 = vmatprep.subr.bf16.mxu0 %v2791_v7  ;;  %1594 = vmatprep.subr.bf16.mxu1 %v2796_v8 }
 0x487   : > { %1583 = vmatprep.mubr.bf16.mxu0 %v2524_v13  ;;  %1624 = vmatprep.mubr.bf16.mxu1 %v2524_v13 }
 0x489   : > { %1554 = vmatpush1.bf16.msra.mxu0 %v2803_v9  ;;  %1595 = vmatpush1.bf16.msra.mxu1 %v2808_v10 }
 0x48a   : > { %1555 = vmatprep.subr.bf16.mxu0 %v2815_v11  ;;  %1596 = vmatprep.subr.bf16.mxu1 %v2820_v12 }
 0x48d   : > { %1556 = vmatpush1.bf16.msra.mxu0 %v2829_v14  ;;  %1597 = vmatpush1.bf16.msra.mxu1 %v2834_v15 }
 0x48e   : > { %1557 = vmatprep.subr.bf16.mxu0 %v2841_v16  ;;  %1598 = vmatprep.subr.bf16.mxu1 %v2846_v17 }
 0x491   : > { %1558 = vmatpush1.bf16.msra.mxu0 %v2853_v18  ;;  %1599 = vmatpush1.bf16.msra.mxu1 %v2858_v19 }
 0x492   : > { %1559 = vmatprep.subr.bf16.mxu0 %v2865_v20  ;;  %1600 = vmatprep.subr.bf16.mxu1 %v2870_v21 }
 0x495   : > { %1560 = vmatpush1.bf16.msra.mxu0 %v2877_v22  ;;  %1601 = vmatpush1.bf16.msra.mxu1 %v2882_v23 }
 0x496   : > { %1561 = vmatprep.subr.bf16.mxu0 %v2889_v24  ;;  %1602 = vmatprep.subr.bf16.mxu1 %v2894_v25 }
 0x499   : > { %1562 = vmatpush1.bf16.msra.mxu0 %v2901_v26  ;;  %1603 = vmatpush1.bf16.msra.mxu1 %v2906_v27 }
 0x49a   : > { %1563 = vmatprep.subr.bf16.mxu0 %v2913_v28  ;;  %1604 = vmatprep.subr.bf16.mxu1 %v2918_v29 }
 0x49d   : > { %1564 = vmatpush1.bf16.msra.mxu0 %v2925_v30  ;;  %1605 = vmatpush1.bf16.msra.mxu1 %v2930_v31 }
 0x49e   : > { %1565 = vmatprep.subr.bf16.mxu0 %v2937_v32  ;;  %1606 = vmatprep.subr.bf16.mxu1 %v2942_v33 }
 0x4a1   : > { %1566 = vmatpush1.bf16.msra.mxu0 %v2949_v34  ;;  %1607 = vmatpush1.bf16.msra.mxu1 %v2954_v35 }
 0x4a2   : > { %1682 = vmatprep.subr.bf16.mxu0 %v2769_v2  ;;  %1723 = vmatprep.subr.bf16.mxu1 %v2774_v3 }
 0x557   : > { %v1456_v58 = vpop.f32.mrb[20].mxu0  ;;  %v1497_v48 = vpop.f32.mrb[20].mxu1 }
 0x558   : > { %v1508_v47 = vrot.slane %v1456_v58, 4  ;;  %v1458_v56 = vpop.f32.mrb[21].mxu0  ;;  %v1499_v55 = vpop.f32.mrb[21].mxu1  ;;  %v1510_v3 = vrot.slane %v1497_v48, 4 }
 0x559   : > { %v1509_v40 = vrot.slane %v1458_v56, 4  ;;  %v1460_v60 = vpop.f32.mrb[22].mxu0  ;;  %v1501_v61 = vpop.f32.mrb[22].mxu1  ;;  %v1511_v44 = vrot.slane %v1499_v55, 4  ;;  %v1540_v55 = vrot.slane %v3158_v46, 7 }
 0x55a   : > { %v1516_v0 = vadd.f32 %v1508_v47, %v3001_v52  ;;  %v1461_v1 = vpop.f32.mrb[23].mxu0  ;;  %v1502_v62 = vpop.f32.mrb[23].mxu1  ;;  %v1518_v37 = vadd.f32 %v1510_v3, %v3010_v42 }
 0x55b   : > { %v1517_v4 = vadd.f32 %v1509_v40, %v3003_v53  ;;  %v1519_v2 = vadd.f32 %v1511_v44, %v3007_v36 }
 0x55c   : > { %v2185_v38 = vmul.f32 -1.442695, %v1516_v0 }
 0x55d   : > { %v2186_v41 = vmul.f32 -1.442695, %v1517_v4  ;;  %v2187_v63 = vmul.f32 -1.442695, %v1519_v2 }
 0x55e   : > { %2420 = vpow2.f32 %v2185_v38 }
 0x55f   : > { %2422 = vpow2.f32 %v2186_v41 }
 0x560   : > { %2424 = vpow2.f32 %v2187_v63 }
 0x561   : > { %2426 = vtanh.f32 %v1518_v37 }
 0x568   : > { %v2421_v49 = vpop.eup %2420 }
 0x569   : > { %v2423_v50 = vpop.eup %2422  ;;  %v1523_v39 = vadd.f32 1.0, %v2421_v49 }
 0x56a   : > { %v1529_v51 = vadd.f32 1.0, %v2423_v50  ;;  %v2425_v58 = vpop.eup %2424 }
 0x56b   : > { %2428 = vrcp.f32 %v1523_v39  ;;  %v2427_v47 = vpop.eup %2426  ;;  %v1536_v61 = vadd.f32 1.0, %v2425_v58 }
 0x56c   : > { %2430 = vrcp.f32 %v1529_v51 }
 0x56d   : > { %2432 = vrcp.f32 %v1536_v61  ;;  %v2491_v61 = vld [vmem:[%s3406_s2 + $0x28] ss:$16 sps:$4 sm:$0xff]  }
 0x575   : > { %v2429_v56 = vpop.eup %2428 }
 0x576   : > { %v2431_v40 = vpop.eup %2430  ;;  %v1543_v60 = vmul.f32 %v2429_v56, %v2427_v47  ;;  %v2486_v47 = vld [vmem:[%s3406_s2] ss:$16 sps:$4 sm:$0xff]   ;;  %v2487_v56 = vld [vmem:[%s3406_s2 + $0x8] ss:$16 sps:$4 sm:$0xff]  }
 0x577   : > { %v1542_v48 = vmul.f32 %v2431_v40, %v1540_v55  ;;  %v2433_v1 = vpop.eup %2432  ;;  %v2488_v55 = vld [vmem:[%s3406_s2 + $0x24] ss:$16 sps:$4 sm:$0xff]   ;;  %v2489_v40 = vld [vmem:[%s3406_s2 + $0x2c] ss:$16 sps:$4 sm:$0xff]  }
 0x579   : > { %v3209_v0 = vadd.f32 %v1543_v60, %v1542_v48  ;;  %v2490_v60 = vld [vmem:[%s3406_s2 + $0x20] ss:$16 sps:$4 sm:$0xff]   ;;  %v2492_v48 = vld [vmem:[%s3406_s2 + $0x44] ss:$16 sps:$4 sm:$0xff]  }
 0x57b   : > { %2434 = vtanh.f32 %v3209_v0 }
 0x585   : > { %v2435_v62 = vpop.eup %2434 }
 0x586   : > { %v3212_v4 = vmul.f32 %v2435_v62, %v2433_v1  ;;  %v2495_v1 = vld [vmem:[%s3406_s2 + $0x48] ss:$16 sps:$4 sm:$0xff]   ;;  %v2496_v62 = vld [vmem:[%s3406_s2 + $0x64] ss:$16 sps:$4 sm:$0xff]  }
 0x588   : > { %v1547_v38 = vpack.c.bf16 %v3212_v4, %v3212_v4  ;;  %v3219_v46 = vsel %vm1942_vm3, %v3168_v54, %v3212_v4 }
 0x58a   : > { %v1549_v41 = vrot.slane %v1547_v38, 2  ;;  %v2497_v38 = vld [vmem:[%s3406_s2 + $0x6c] ss:$16 sps:$4 sm:$0xff]  }
 0x58c   : > { %1584 = vmatmul.mubr.bf16.vlgmr.msra.gmra.mrb[24].mxu0 %v1549_v41  ;;  %1625 = vmatmul.mubr.bf16.vlgmr.msra.gmra.mrb[24].mxu1 %v1549_v41  ;;  %v2499_v41 = vld [vmem:[%s3406_s2 + $0x68] ss:$16 sps:$4 sm:$0xff]  }
 0x58d   : > { %1683 = vmatpush1.bf16.msra.mxu0 %v2779_v5  ;;  %1724 = vmatpush1.bf16.msra.mxu1 %v2784_v6  ;;  %v2484_v5 = vld [vmem:[%s3406_s2 + $0x4] ss:$16 sps:$4 sm:$0xff]   ;;  %v2485_v6 = vld [vmem:[%s3406_s2 + $0xc] ss:$16 sps:$4 sm:$0xff]  }
 0x58e   : > { %1684 = vmatprep.subr.bf16.mxu0 %v2791_v7  ;;  %1725 = vmatprep.subr.bf16.mxu1 %v2796_v8 }
 0x58f   : > { %1714 = vmatprep.mubr.bf16.mxu0 %v2524_v13  ;;  %1755 = vmatprep.mubr.bf16.mxu1 %v2524_v13 }
 0x591   : > { %1685 = vmatpush1.bf16.msra.mxu0 %v2803_v9  ;;  %1726 = vmatpush1.bf16.msra.mxu1 %v2808_v10 }
 0x592   : > { %1686 = vmatprep.subr.bf16.mxu0 %v2815_v11  ;;  %1727 = vmatprep.subr.bf16.mxu1 %v2820_v12 }
 0x595   : > { %1687 = vmatpush1.bf16.msra.mxu0 %v2829_v14  ;;  %1728 = vmatpush1.bf16.msra.mxu1 %v2834_v15 }
 0x596   : > { %1688 = vmatprep.subr.bf16.mxu0 %v2841_v16  ;;  %1729 = vmatprep.subr.bf16.mxu1 %v2846_v17 }
 0x599   : > { %1689 = vmatpush1.bf16.msra.mxu0 %v2853_v18  ;;  %1730 = vmatpush1.bf16.msra.mxu1 %v2858_v19 }
 0x59a   : > { %1690 = vmatprep.subr.bf16.mxu0 %v2865_v20  ;;  %1731 = vmatprep.subr.bf16.mxu1 %v2870_v21 }
 0x59d   : > { %1691 = vmatpush1.bf16.msra.mxu0 %v2877_v22  ;;  %1732 = vmatpush1.bf16.msra.mxu1 %v2882_v23 }
 0x59e   : > { %1692 = vmatprep.subr.bf16.mxu0 %v2889_v24  ;;  %1733 = vmatprep.subr.bf16.mxu1 %v2894_v25 }
 0x5a1   : > { %1693 = vmatpush1.bf16.msra.mxu0 %v2901_v26  ;;  %1734 = vmatpush1.bf16.msra.mxu1 %v2906_v27 }
 0x5a2   : > { %1694 = vmatprep.subr.bf16.mxu0 %v2913_v28  ;;  %1735 = vmatprep.subr.bf16.mxu1 %v2918_v29 }
 0x5a5   : > { %1695 = vmatpush1.bf16.msra.mxu0 %v2925_v30  ;;  %1736 = vmatpush1.bf16.msra.mxu1 %v2930_v31 }
 0x5a6   : > { %1696 = vmatprep.subr.bf16.mxu0 %v2937_v32  ;;  %1737 = vmatprep.subr.bf16.mxu1 %v2942_v33 }
 0x5a9   : > { %1697 = vmatpush1.bf16.msra.mxu0 %v2949_v34  ;;  %1738 = vmatpush1.bf16.msra.mxu1 %v2954_v35  ;;  %v1669_v34 = vrot.slane %v3209_v0, 7  ;;  %v2493_v0 = vld [vmem:[%s3406_s2 + $0x4c] ss:$16 sps:$4 sm:$0xff]  }
 0x5aa   : > { %1811 = vmatprep.subr.bf16.mxu0 %v2484_v5  ;;  %1852 = vmatprep.subr.bf16.mxu1 %v2485_v6  ;;  %v2500_v5 = vld [vmem:[%s3406_s2 + $0x84] ss:$16 sps:$4 sm:$0xff]   ;;  %v2501_v6 = vld [vmem:[%s3406_s2 + $0x8c] ss:$16 sps:$4 sm:$0xff]  }
 0x65f   : > { %v1585_v7 = vpop.f32.mrb[24].mxu0  ;;  %v1626_v8 = vpop.f32.mrb[24].mxu1 }
 0x660   : > { %v1637_v9 = vrot.slane %v1585_v7, 3  ;;  %v1587_v10 = vpop.f32.mrb[25].mxu0  ;;  %v1628_v11 = vpop.f32.mrb[25].mxu1  ;;  %v1639_v24 = vrot.slane %v1626_v8, 3  ;;  %v2502_v7 = vld [vmem:[%s3406_s2 + $0x80] ss:$16 sps:$4 sm:$0xff]  }
 0x661   : > { %v1638_v12 = vrot.slane %v1587_v10, 3  ;;  %v1589_v14 = vpop.f32.mrb[26].mxu0  ;;  %v1630_v15 = vpop.f32.mrb[26].mxu1  ;;  %v1640_v22 = vrot.slane %v1628_v11, 3  ;;  %v2503_v8 = vld [vmem:[%s3406_s2 + $0x88] ss:$16 sps:$4 sm:$0xff]  }
 0x662   : > { %v1645_v16 = vadd.f32 %v1637_v9, %v3001_v52  ;;  %v1590_v17 = vpop.f32.mrb[27].mxu0  ;;  %v1631_v18 = vpop.f32.mrb[27].mxu1  ;;  %v1647_v26 = vadd.f32 %v1639_v24, %v3010_v42  ;;  %v2504_v9 = vld [vmem:[%s3406_s2 + $0xa4] ss:$16 sps:$4 sm:$0xff]   ;;  %v2505_v10 = vld [vmem:[%s3406_s2 + $0xac] ss:$16 sps:$4 sm:$0xff]  }
 0x663   : > { %v1646_v19 = vadd.f32 %v1638_v12, %v3003_v53  ;;  %v1648_v23 = vadd.f32 %v1640_v22, %v3007_v36  ;;  %v2506_v11 = vld [vmem:[%s3406_s2 + $0xa0] ss:$16 sps:$4 sm:$0xff]   ;;  %v2507_v12 = vld [vmem:[%s3406_s2 + $0xa8] ss:$16 sps:$4 sm:$0xff]   ;;  %v2508_v14 = vld [vmem:[%s3406_s2 + $0xc4] ss:$16 sps:$4 sm:$0xff]  }
 0x664   : > { %v2188_v20 = vmul.f32 -1.442695, %v1645_v16  ;;  %v2509_v15 = vld [vmem:[%s3406_s2 + $0xcc] ss:$16 sps:$4 sm:$0xff]   ;;  %v2510_v16 = vld [vmem:[%s3406_s2 + $0xc0] ss:$16 sps:$4 sm:$0xff]  }
 0x665   : > { %v2189_v21 = vmul.f32 -1.442695, %v1646_v19  ;;  %v2190_v25 = vmul.f32 -1.442695, %v1648_v23  ;;  %v2511_v17 = vld [vmem:[%s3406_s2 + $0xc8] ss:$16 sps:$4 sm:$0xff]  }
 0x666   : > { %2436 = vpow2.f32 %v2188_v20  ;;  %v2512_v18 = vld [vmem:[%s3406_s2 + $0xe4] ss:$16 sps:$4 sm:$0xff]   ;;  %v2513_v19 = vld [vmem:[%s3406_s2 + $0xec] ss:$16 sps:$4 sm:$0xff]   ;;  %v2514_v20 = vld [vmem:[%s3406_s2 + $0xe0] ss:$16 sps:$4 sm:$0xff]  }
 0x667   : > { %2438 = vpow2.f32 %v2189_v21  ;;  %v2515_v21 = vld [vmem:[%s3406_s2 + $0xe8] ss:$16 sps:$4 sm:$0xff]  }
 0x668   : > { %2440 = vpow2.f32 %v2190_v25 }
 0x669   : > { %2442 = vtanh.f32 %v1647_v26 }
 0x670   : > { %v2437_v27 = vpop.eup %2436 }
 0x671   : > { %v2439_v28 = vpop.eup %2438  ;;  %v1652_v29 = vadd.f32 1.0, %v2437_v27 }
 0x672   : > { %v1658_v30 = vadd.f32 1.0, %v2439_v28  ;;  %v2441_v31 = vpop.eup %2440 }
 0x673   : > { %2444 = vrcp.f32 %v1652_v29  ;;  %v2443_v32 = vpop.eup %2442  ;;  %v1665_v44 = vadd.f32 1.0, %v2441_v31 }
 0x674   : > { %2446 = vrcp.f32 %v1658_v30 }
 0x675   : > { %2448 = vrcp.f32 %v1665_v44 }
 0x67d   : > { %v2445_v33 = vpop.eup %2444 }
 0x67e   : > { %v2447_v35 = vpop.eup %2446  ;;  %v1672_v54 = vmul.f32 %v2445_v33, %v2443_v32 }
 0x67f   : > { %v1671_v2 = vmul.f32 %v2447_v35, %v1669_v34  ;;  %v2449_v63 = vpop.eup %2448 }
 0x681   : > { %v3264_v3 = vadd.f32 %v1672_v54, %v1671_v2 }
 0x683   : > { %2450 = vtanh.f32 %v3264_v3 }
 0x68d   : > { %v2451_v37 = vpop.eup %2450 }
 0x68e   : > { %v3267_v49 = vmul.f32 %v2451_v37, %v2449_v63 }
 0x690   : > { %v1676_v50 = vpack.c.bf16 %v3267_v49, %v3267_v49  ;;  %v3274_v39 = vsel %vm1944_vm4, %v3219_v46, %v3267_v49  ;;  %v2498_v46 = vld [vmem:[%s3406_s2 + $0x60] ss:$16 sps:$4 sm:$0xff]  }
 0x692   : > { %v1678_v51 = vshrl.u32 %v1676_v50, 16 }
 0x694   : > { %v1680_v58 = vrot.slane %v1678_v51, 2 }
 0x696   : > { %1715 = vmatmul.mubr.bf16.vlgmr.msra.gmra.mrb[28].mxu0 %v1680_v58  ;;  %1756 = vmatmul.mubr.bf16.vlgmr.msra.gmra.mrb[28].mxu1 %v1680_v58 }
 0x697   : > { %1812 = vmatpush1.bf16.msra.mxu0 %v2486_v47  ;;  %1853 = vmatpush1.bf16.msra.mxu1 %v2487_v56 }
 0x698   : > { %1813 = vmatprep.subr.bf16.mxu0 %v2488_v55  ;;  %1854 = vmatprep.subr.bf16.mxu1 %v2489_v40 }
 0x699   : > { %1843 = vmatprep.mubr.bf16.mxu0 %v2524_v13  ;;  %1884 = vmatprep.mubr.bf16.mxu1 %v2524_v13  ;;  %v2494_v13 = vld [vmem:[%s3406_s2 + $0x40] ss:$16 sps:$4 sm:$0xff]  }
 0x69b   : > { %1814 = vmatpush1.bf16.msra.mxu0 %v2490_v60  ;;  %1855 = vmatpush1.bf16.msra.mxu1 %v2491_v61  ;;  %v1800_v60 = vrot.slane %v3264_v3, 7 }
 0x69c   : > { %1815 = vmatprep.subr.bf16.mxu0 %v2492_v48  ;;  %1856 = vmatprep.subr.bf16.mxu1 %v2493_v0 }
 0x69f   : > { %1816 = vmatpush1.bf16.msra.mxu0 %v2494_v13  ;;  %1857 = vmatpush1.bf16.msra.mxu1 %v2495_v1 }
 0x6a0   : > { %1817 = vmatprep.subr.bf16.mxu0 %v2496_v62  ;;  %1858 = vmatprep.subr.bf16.mxu1 %v2497_v38 }
 0x6a3   : > { %1818 = vmatpush1.bf16.msra.mxu0 %v2498_v46  ;;  %1859 = vmatpush1.bf16.msra.mxu1 %v2499_v41 }
 0x6a4   : > { %1819 = vmatprep.subr.bf16.mxu0 %v2500_v5  ;;  %1860 = vmatprep.subr.bf16.mxu1 %v2501_v6 }
 0x6a7   : > { %1820 = vmatpush1.bf16.msra.mxu0 %v2502_v7  ;;  %1861 = vmatpush1.bf16.msra.mxu1 %v2503_v8 }
 0x6a8   : > { %1821 = vmatprep.subr.bf16.mxu0 %v2504_v9  ;;  %1862 = vmatprep.subr.bf16.mxu1 %v2505_v10 }
 0x6ab   : > { %1822 = vmatpush1.bf16.msra.mxu0 %v2506_v11  ;;  %1863 = vmatpush1.bf16.msra.mxu1 %v2507_v12 }
 0x6ac   : > { %1823 = vmatprep.subr.bf16.mxu0 %v2508_v14  ;;  %1864 = vmatprep.subr.bf16.mxu1 %v2509_v15 }
 0x6af   : > { %1824 = vmatpush1.bf16.msra.mxu0 %v2510_v16  ;;  %1865 = vmatpush1.bf16.msra.mxu1 %v2511_v17 }
 0x6b0   : > { %1825 = vmatprep.subr.bf16.mxu0 %v2512_v18  ;;  %1866 = vmatprep.subr.bf16.mxu1 %v2513_v19 }
 0x6b3   : > { %1826 = vmatpush1.bf16.msra.mxu0 %v2514_v20  ;;  %1867 = vmatpush1.bf16.msra.mxu1 %v2515_v21 }
 0x769   : > { %v1716_v22 = vpop.f32.mrb[28].mxu0  ;;  %v1757_v23 = vpop.f32.mrb[28].mxu1 }
 0x76a   : > { %v1768_v24 = vrot.slane %v1716_v22, 2  ;;  %v1718_v25 = vpop.f32.mrb[29].mxu0  ;;  %v1759_v26 = vpop.f32.mrb[29].mxu1  ;;  %v1770_v2 = vrot.slane %v1757_v23, 2 }
 0x76b   : > { %v1769_v27 = vrot.slane %v1718_v25, 2  ;;  %v1720_v28 = vpop.f32.mrb[30].mxu0  ;;  %v1761_v29 = vpop.f32.mrb[30].mxu1  ;;  %v1771_v54 = vrot.slane %v1759_v26, 2 }
 0x76c   : > { %v1776_v30 = vadd.f32 %v1768_v24, %v3001_v52  ;;  %v1721_v31 = vpop.f32.mrb[31].mxu0  ;;  %v1762_v32 = vpop.f32.mrb[31].mxu1  ;;  %v1778_v37 = vadd.f32 %v1770_v2, %v3010_v42 }
 0x76d   : > { %v1777_v33 = vadd.f32 %v1769_v27, %v3003_v53  ;;  %v1779_v44 = vadd.f32 %v1771_v54, %v3007_v36 }
 0x76e   : > { %v2191_v34 = vmul.f32 -1.442695, %v1776_v30 }
 0x76f   : > { %v2192_v35 = vmul.f32 -1.442695, %v1777_v33  ;;  %v2193_v63 = vmul.f32 -1.442695, %v1779_v44 }
 0x770   : > { %2452 = vpow2.f32 %v2191_v34 }
 0x771   : > { %2454 = vpow2.f32 %v2192_v35 }
 0x772   : > { %2456 = vpow2.f32 %v2193_v63 }
 0x773   : > { %2458 = vtanh.f32 %v1778_v37  ;;  %v1957_v37 = vrot.slane %v3267_v49, 3  ;;  %v1972_v49 = vrot.slane %v3016_v59, 1 }
 0x77a   : > { %v2453_v50 = vpop.eup %2452 }
 0x77b   : > { %v2455_v51 = vpop.eup %2454  ;;  %v1783_v58 = vadd.f32 1.0, %v2453_v50  ;;  %v1960_v50 = vrot.slane %v3212_v4, 1 }
 0x77c   : > { %v1789_v47 = vadd.f32 1.0, %v2455_v51  ;;  %v2457_v56 = vpop.eup %2456 }
 0x77d   : > { %2460 = vrcp.f32 %v1783_v58  ;;  %v2459_v55 = vpop.eup %2458  ;;  %v1796_v0 = vadd.f32 1.0, %v2457_v56  ;;  %v1963_v58 = vrot.slane %v3161_v45, 7  ;;  %v1966_v56 = vrot.slane %v3108_v57, 5 }
 0x77e   : > { %2462 = vrcp.f32 %v1789_v47 }
 0x77f   : > { %2464 = vrcp.f32 %v1796_v0 }
 0x787   : > { %v2461_v40 = vpop.eup %2460 }
 0x788   : > { %v2463_v61 = vpop.eup %2462  ;;  %v1803_v48 = vmul.f32 %v2461_v40, %v2459_v55  ;;  %v1969_v40 = vrot.slane %v3062_v43, 3 }
 0x789   : > { %v1802_v13 = vmul.f32 %v2463_v61, %v1800_v60  ;;  %v2465_v62 = vpop.eup %2464 }
 0x78b   : > { %v1804_v1 = vadd.f32 %v1803_v48, %v1802_v13 }
 0x78d   : > { %2466 = vtanh.f32 %v1804_v1  ;;  %v1929_v30 = vrot.slane %v1804_v1, 7 }
 0x797   : > { %v2467_v38 = vpop.eup %2466 }
 0x798   : > { %v1806_v46 = vmul.f32 %v2467_v38, %v2465_v62 }
 0x79a   : > { %v1807_v41 = vpack.c.bf16 %v1806_v46, %v1806_v46  ;;  %v1947_v5 = vsel %vm1946_vm5, %v3274_v39, %v1806_v46  ;;  %v1954_v44 = vrot.slane %v1806_v46, 5 }
 0x79c   : > { %v1809_v6 = vrot.slane %v1807_v41, 3 }
 0x79e   : > { %1844 = vmatmul.mubr.bf16.vlgmr.msra.gmra.mrb[32].mxu0 %v1809_v6  ;;  %1885 = vmatmul.mubr.bf16.vlgmr.msra.gmra.mrb[32].mxu1 %v1809_v6 }
 0x871   : > { %v1845_v7 = vpop.f32.mrb[32].mxu0  ;;  %v1886_v3 = vpop.f32.mrb[32].mxu1 }
 0x872   : > { %v1897_v8 = vrot.slane %v1845_v7, 1  ;;  %v1847_v9 = vpop.f32.mrb[33].mxu0  ;;  %v1888_v10 = vpop.f32.mrb[33].mxu1  ;;  %v1899_v22 = vrot.slane %v1886_v3, 1 }
 0x873   : > { %v1898_v11 = vrot.slane %v1847_v9, 1  ;;  %v1849_v12 = vpop.f32.mrb[34].mxu0  ;;  %v1890_v14 = vpop.f32.mrb[34].mxu1  ;;  %v1900_v39 = vrot.slane %v1888_v10, 1 }
 0x874   : > { %v1905_v15 = vadd.f32 %v1897_v8, %v3001_v52  ;;  %v1850_v16 = vpop.f32.mrb[35].mxu0  ;;  %v1891_v17 = vpop.f32.mrb[35].mxu1  ;;  %v1907_v24 = vadd.f32 %v1899_v22, %v3010_v42 }
 0x875   : > { %v1906_v18 = vadd.f32 %v1898_v11, %v3003_v53  ;;  %v1908_v21 = vadd.f32 %v1900_v39, %v3007_v36 }
 0x876   : > { %v2194_v19 = vmul.f32 -1.442695, %v1905_v15 }
 0x877   : > { %v2195_v20 = vmul.f32 -1.442695, %v1906_v18  ;;  %v2196_v23 = vmul.f32 -1.442695, %v1908_v21 }
 0x878   : > { %2468 = vpow2.f32 %v2194_v19 }
 0x879   : > { %2470 = vpow2.f32 %v2195_v20 }
 0x87a   : > { %2472 = vpow2.f32 %v2196_v23 }
 0x87b   : > { %2474 = vtanh.f32 %v1907_v24 }
 0x882   : > { %v2469_v25 = vpop.eup %2468 }
 0x883   : > { %v2471_v26 = vpop.eup %2470  ;;  %v1912_v27 = vadd.f32 1.0, %v2469_v25 }
 0x884   : > { %v1918_v52 = vadd.f32 1.0, %v2471_v26  ;;  %v2473_v53 = vpop.eup %2472 }
 0x885   : > { %2476 = vrcp.f32 %v1912_v27  ;;  %v2475_v28 = vpop.eup %2474  ;;  %v1925_v33 = vadd.f32 1.0, %v2473_v53 }
 0x886   : > { %2478 = vrcp.f32 %v1918_v52 }
 0x887   : > { %2480 = vrcp.f32 %v1925_v33 }
 0x88f   : > { %v2477_v29 = vpop.eup %2476 }
 0x890   : > { %v2479_v31 = vpop.eup %2478  ;;  %v1932_v32 = vmul.f32 %v2477_v29, %v2475_v28 }
 0x891   : > { %v1931_v36 = vmul.f32 %v2479_v31, %v1929_v30  ;;  %v2481_v42 = vpop.eup %2480 }
 0x893   : > { %v1933_v34 = vadd.f32 %v1932_v32, %v1931_v36 }
 0x895   : > { %2482 = vtanh.f32 %v1933_v34 }
 0x89f   : > { %v2483_v35 = vpop.eup %2482 }
 0x8a0   : > { %v1935_v54 = vmul.f32 %v2483_v35, %v2481_v42 }
 0x8a2   : > { %v1949_v2 = vsel %vm1948_vm6, %v1947_v5, %v1935_v54  ;;  %v1951_v63 = vrot.slane %v1935_v54, 7  ;;  %1985 = vrot.lane.b32.xlu0 %v1935_v54, %s2525_s29 }
 0x8a4   : > { %v1974_v51 = vsel %vm1936_vm0, %v1951_v63, %v1954_v44 }
 0x8a5   : > { %v1975_v47 = vsel %vm1938_vm1, %v1974_v51, %v1957_v37 }
 0x8a6   : > { %v1976_v55 = vsel %vm1940_vm2, %v1975_v47, %v1960_v50 }
 0x8a7   : > { %v1977_v60 = vsel %vm1942_vm3, %v1976_v55, %v1963_v58 }
 0x8a8   : > { %v1978_v4 = vsel %vm1944_vm4, %v1977_v60, %v1966_v56 }
 0x8a9   : > { %v1979_v61 = vsel %vm1946_vm5, %v1978_v4, %v1969_v40 }
 0x8aa   : > { %v1980_v45 = vsel %vm1948_vm6, %v1979_v61, %v1972_v49 }
 0x8ab   : > { %v1982_v57 = vsel %vm1981_vm7, %v1949_v2, %v1980_v45 }
 0x8ac   : > { %v1983_v48 = vpack.c.bf16 %v1982_v57, %v1982_v57 }
 0x8ae   : > { %1984 = vst [vmem:[%s228_s8] sm:$0xf] %v1983_v48 }
 0x914   : > { %v1986_v43 = vpop.permute.xlu0 %1985 }
 0x915   : > { %1988 = vst [vmem:[%s231_s11 - $0x7] sm:$0x80] %v1986_v43 }
 0x916 PF: > { %s16_s18 = sadd.s32 1, %s2522_s18  }
 0x917   : > { %p13_p4 = scmp.ge.s32.totalorder %s16_s18, 4  }
 0x919   :  { %15 = sbr.rel (!%p13_p4) target bundleno = 1 (0x1), region = 78 }

</bundles_post_ra>
